<compile_context>
chip_gen: v7x
topology: tpu7x:2x2x1
jax: 0.10.0
libtpu: 0.0.40
codegen_flags: <defaults>
</compile_context>

<pallas_src>
import math

import jax
import jax.numpy as jnp
from jax import lax
from jax.experimental import pallas as pl
from jax.experimental.pallas import tpu as pltpu


# ----------------------------------------------------------------------------
# Kernel
# ----------------------------------------------------------------------------
def _make_kernel(*, Bt, S, D, Dp, h, d_h, mm_dtype, approx_recip):
    f32 = jnp.float32
    eps = 1e-5                      # torch.nn.LayerNorm default
    pad = Dp - D
    inv_d = 1.0 / float(D)

    def kernel(x_ref, w_ref, b_ref, wox_ref, gamma_ref, beta_ref, o_ref):
        x_in = x_ref[...]                                   # (Bt*S, Dp) f32
        x_mm = x_in.astype(mm_dtype)

        # Fused [Wq*s | Wk | Wv | Wo_q] projection: ONE MXU pass over the slab.
        proj = jnp.dot(x_mm, w_ref[...], preferred_element_type=f32) + b_ref[...]

        # Slab-level casts (once per grid step, not per head/batch).
        q = proj[:, 0 * Dp:1 * Dp].astype(mm_dtype)         # scale pre-folded
        k = proj[:, 1 * Dp:2 * Dp].astype(mm_dtype)
        v = proj[:, 2 * Dp:3 * Dp].astype(mm_dtype)
        # Residual + query half of the split output projection (concat removed):
        #   out = x @ Wo_q + bo + x  (+ attention part added per batch below)
        base = proj[:, 3 * Dp:4 * Dp] + x_in                 # (rows, Dp) f32

        wox = wox_ref[...]                                   # (D, Dp) mm_dtype
        gamma = gamma_ref[...]                               # (1, Dp) f32
        beta = beta_ref[...]

        if pad:
            lane = lax.broadcasted_iota(jnp.int32, (1, Dp), 1)
            lane_mask = (lane < D).astype(f32)

        # TODO(synk): for large Bt*h switch these unrolled loops to
        # lax.fori_loop and tile the KV axis with an online softmax for S>=512.
        for b in range(Bt):
            r0 = b * S
            qb = q[r0:r0 + S]
            kb = k[r0:r0 + S]
            vb = v[r0:r0 + S]

            heads = []
            for hd in range(h):
                c0 = hd * d_h
                qh = qb[:, c0:c0 + d_h]                      # (S, d_h)
                kh = kb[:, c0:c0 + d_h]
                vh = vb[:, c0:c0 + d_h]
                # q @ k^T without materializing a transposed copy of k.
                s = lax.dot_general(qh, kh, (((1,), (1,)), ((), ())),
                                    preferred_element_type=f32)      # (S, S)
                m = jnp.max(s, axis=-1, keepdims=True)
                e = jnp.exp(s - m)
                denom = jnp.sum(e, axis=-1, keepdims=True)
                if approx_recip:
                    p = e * pl.reciprocal(denom, approx=True)        # EUP slot
                else:
                    p = e / denom                                    # exact
                heads.append(jnp.dot(p.astype(mm_dtype), vh,
                                     preferred_element_type=f32))    # (S, d_h)

            # Re-fuse ALL heads along lanes, then one K=D output projection.
            xb = jnp.concatenate(heads, axis=-1).astype(mm_dtype)    # (S, D)
            out_b = base[r0:r0 + S] + jnp.dot(xb, wox,
                                              preferred_element_type=f32)

            # LayerNorm over the true D features (padded lanes are exactly 0).
            mean = jnp.sum(out_b, axis=-1, keepdims=True) * inv_d
            cent = out_b - mean
            if pad:
                cent = cent * lane_mask
            var = jnp.sum(cent * cent, axis=-1, keepdims=True) * inv_d
            normed = cent * lax.rsqrt(var + eps)
            o_ref[r0:r0 + S, :] = (normed * gamma + beta).astype(o_ref.dtype)

    return kernel


# ----------------------------------------------------------------------------
# One-time parameter preparation (hoisted out of the hot path)
# ----------------------------------------------------------------------------
def _round_up(n, m):
    return ((n + m - 1) // m) * m


def prepare_mha_params(params, *, h, matmul_dtype=jnp.bfloat16):
    """Transpose / fuse / scale-fold / lane-pad the PyTorch-layout weights once.

    bf16 MXU operands are recommended on v5e/v6e/v7x (f32 accumulation; softmax
    and LayerNorm arithmetic stay f32 inside the kernel). Pass
    matmul_dtype=jnp.float32 only when the tightest numerical match is needed.
    """
    f32 = jnp.float32
    D = params["wq"].shape[0]
    assert D % h == 0
    d_h = D // h
    Dp = _round_up(D, 128)                 # lane-dense padded feature dim
    scale = 1.0 / math.sqrt(d_h)

    def pad2(a, r, c):
        return jnp.pad(a, ((0, r - a.shape[0]), (0, c - a.shape[1])))

    def pad1(a, n):
        return jnp.pad(a, (0, n - a.shape[0]))

    wo_t = params["wo"].astype(f32).T                      # (2D, D)
    # Fused projection: [Wq^T * scale | Wk^T | Wv^T | Wo_q] -> (Dp, 4*Dp)
    w_blocks = [params["wq"].astype(f32).T * scale,
                params["wk"].astype(f32).T,
                params["wv"].astype(f32).T,
                wo_t[:D, :]]                               # acts on query
    w = jnp.concatenate([pad2(blk, Dp, Dp) for blk in w_blocks],
                        axis=1).astype(matmul_dtype)       # (Dp, 4*Dp)

    b_blocks = [params["bq"].astype(f32) * scale,
                params["bk"].astype(f32),
                params["bv"].astype(f32),
                params["bo"].astype(f32)]
    b = jnp.concatenate([pad1(vb, Dp) for vb in b_blocks]).reshape(1, 4 * Dp)

    wox = pad2(wo_t[D:, :], D, Dp).astype(matmul_dtype)    # acts on attn out
    gamma = pad1(params["gamma"].astype(f32), Dp).reshape(1, Dp)
    beta = pad1(params["beta"].astype(f32), Dp).reshape(1, Dp)

    return dict(h=h, D=D, d_h=d_h, Dp=Dp, matmul_dtype=matmul_dtype,
                w=w, b=b, wox=wox, gamma=gamma, beta=beta)


# ----------------------------------------------------------------------------
# Grid / VMEM heuristics
# ----------------------------------------------------------------------------
def _vmem_capacity_bytes():
    try:
        return int(pltpu.get_tpu_info().vmem_capacity_bytes)
    except Exception:
        return 64 * 1024 * 1024            # conservative (v7x per-TC VMEM)


def _min_parallel_grid_steps():
    # v7x has 2 TensorCores per chip: feed both via the 'parallel' grid axis.
    try:
        kind = jax.devices()[0].device_kind.lower()
        if "v7" in kind or "7x" in kind:
            return 2
    except Exception:
        pass
    return 1


def _choose_grid_steps(B, S, Dp, weight_bytes, *, min_parallel, vmem_budget):
    def per_step_bytes(steps):
        rows = (B // steps) * S
        # in+out DMA windows (double-buffered) + fused projection result (4
        # slabs) + q/k/v casts + base + spill headroom: ~12 slab-equivalents.
        return 12 * rows * Dp * 4

    cands = [s for s in range(1, B + 1)
             if B % s == 0 and (s == 1 or ((B // s) * S) % 8 == 0)]
    fits = [s for s in cands if weight_bytes + per_step_bytes(s) <= vmem_budget]
    preferred = [s for s in fits if s >= min_parallel]
    if preferred:
        return min(preferred)
    if fits:
        return max(fits)
    return max(cands)


# ----------------------------------------------------------------------------
# Wrapper
# ----------------------------------------------------------------------------
def mha_self_attention(x, prepared, *, approx_recip=None, grid_steps=None,
                       single_buffer_weights=True):
    """Self-attention MultiHeadedAttention forward (mask=None, eval dropout).

    x: (B, S, D) float32; `prepared` from prepare_mha_params(). Returns (B, S, D).
    """
    B, S, D = x.shape
    assert D == prepared["D"]
    h, d_h, Dp = prepared["h"], prepared["d_h"], prepared["Dp"]
    mm_dtype = prepared["matmul_dtype"]
    if approx_recip is None:
        approx_recip = (mm_dtype == jnp.bfloat16)

    f32 = jnp.float32
    x2 = x.reshape(B * S, D).astype(f32)
    if Dp != D:
        x2 = jnp.pad(x2, ((0, 0), (0, Dp - D)))            # lane-dense I/O slab

    w, b = prepared["w"], prepared["b"]
    wox, gamma, beta = prepared["wox"], prepared["gamma"], prepared["beta"]
    weight_bytes = sum(int(a.size) * a.dtype.itemsize
                       for a in (w, b, wox, gamma, beta))

    capacity = _vmem_capacity_bytes()
    if grid_steps is None:
        grid_steps = _choose_grid_steps(
            B, S, Dp, weight_bytes,
            min_parallel=_min_parallel_grid_steps(),
            vmem_budget=int(0.4 * capacity))
    assert B % grid_steps == 0
    Bt = B // grid_steps
    rows = Bt * S
    assert grid_steps == 1 or rows % 8 == 0, \
        "Bt*S must be a multiple of 8 unless the grid is a single step"

    est_bytes = weight_bytes + 12 * rows * Dp * 4
    vmem_limit = int(min(0.8 * capacity, max(2 * est_bytes, 32 * 1024 * 1024)))

    kernel = _make_kernel(Bt=Bt, S=S, D=D, Dp=Dp, h=h, d_h=d_h,
                          mm_dtype=mm_dtype, approx_recip=approx_recip)

    def run(single_buffer):
        def const_spec(shape):
            if single_buffer:
                # Grid-invariant operand: no double-buffering benefit.
                return pl.BlockSpec(shape, lambda i: (0, 0),
                                    pipeline_mode=pl.Buffered(1))
            return pl.BlockSpec(shape, lambda i: (0, 0))

        row_spec = pl.BlockSpec((rows, Dp), lambda i: (i, 0))
        return pl.pallas_call(
            kernel,
            out_shape=jax.ShapeDtypeStruct((B * S, Dp), f32),
            grid_spec=pltpu.PrefetchScalarGridSpec(
                num_scalar_prefetch=0,
                grid=(grid_steps,),
                in_specs=[row_spec,
                          const_spec(w.shape), const_spec(b.shape),
                          const_spec(wox.shape),
                          const_spec(gamma.shape), const_spec(beta.shape)],
                out_specs=pl.BlockSpec((rows, Dp), lambda i: (i, 0)),
            ),
            compiler_params=pltpu.CompilerParams(
                dimension_semantics=("parallel",),
                vmem_limit_bytes=vmem_limit),
        )(x2, w, b, wox, gamma, beta)

    if single_buffer_weights:
        try:
            out2 = run(True)
        except Exception:
            # Fallback for Pallas versions without per-spec pipeline_mode.
            out2 = run(False)
    else:
        out2 = run(False)

    if Dp != D:
        out2 = out2[:, :D]
    return out2.reshape(B, S, D).astype(x.dtype)


# ----------------------------------------------------------------------------
# Pure-JAX reference (mirrors the PyTorch forward; query = key = value = x)
# ----------------------------------------------------------------------------
def _reference(x, params, *, h):
    B, S, D = x.shape
    d_h = D // h

    def lin(t, w, bb):
        return t @ w.T + bb

    q = lin(x, params["wq"], params["bq"]).reshape(B, S, h, d_h).transpose(0, 2, 1, 3)
    k = lin(x, params["wk"], params["bk"]).reshape(B, S, h, d_h).transpose(0, 2, 1, 3)
    v = lin(x, params["wv"], params["bv"]).reshape(B, S, h, d_h).transpose(0, 2, 1, 3)

    scores = jnp.einsum("bhqd,bhkd->bhqk", q, k) / math.sqrt(d_h)
    p = jax.nn.softmax(scores, axis=-1)
    attn = jnp.einsum("bhqk,bhkd->bhqd", p, v).transpose(0, 2, 1, 3).reshape(B, S, D)

    qx = jnp.concatenate([x, attn], axis=-1)
    out = lin(qx, params["wo"], params["bo"]) + x

    mean = out.mean(-1, keepdims=True)
    var = ((out - mean) ** 2).mean(-1, keepdims=True)
    normed = (out - mean) / jnp.sqrt(var + 1e-5)
    return normed * params["gamma"] + params["beta"]


if __name__ == "__main__":
    # Small shapes consistent with the module: batch=2, seq=8, hidden=32, h=4.
    B, S, D, H = 2, 8, 32, 4

    key0 = jax.random.PRNGKey(0)
    ks = jax.random.split(key0, 10)
    sc = 0.1
    params = {
        "wq": sc * jax.random.normal(ks[0], (D, D), jnp.float32),
        "bq": sc * jax.random.normal(ks[1], (D,), jnp.float32),
        "wk": sc * jax.random.normal(ks[2], (D, D), jnp.float32),
        "bk": sc * jax.random.normal(ks[3], (D,), jnp.float32),
        "wv": sc * jax.random.normal(ks[4], (D, D), jnp.float32),
        "bv": sc * jax.random.normal(ks[5], (D,), jnp.float32),
        "wo": sc * jax.random.normal(ks[6], (D, 2 * D), jnp.float32),   # (out, in)
        "bo": sc * jax.random.normal(ks[7], (D,), jnp.float32),
        "gamma": jnp.ones((D,), jnp.float32),
        "beta": jnp.zeros((D,), jnp.float32),
    }
    x = jax.random.normal(ks[8], (B, S, D), jnp.float32)

    ref = _reference(x, params, h=H)

    # f32 MXU operands + exact softmax divide: validation baseline.
    prep_f32 = prepare_mha_params(params, h=H, matmul_dtype=jnp.float32)
    out_f32 = jax.block_until_ready(
        mha_self_attention(x, prep_f32, approx_recip=False))
    assert out_f32.shape == (B, S, D)
    assert jnp.allclose(out_f32, ref, rtol=1e-4, atol=1e-4), "f32 mismatch vs reference"

    # bf16 MXU operands (recommended on v5e/v6e/v7x): f32 softmax / LayerNorm.
    prep_bf16 = prepare_mha_params(params, h=H)            # default bf16
    out_bf16 = jax.block_until_ready(mha_self_attention(x, prep_bf16))
    assert jnp.allclose(out_bf16, ref, rtol=5e-2, atol=5e-2), "bf16 mismatch vs reference"

    print("KERNEL_OK")
</pallas_src>

<mosaic_0001>
module attributes {stable_mosaic.version = 11 : i64} {
  func.func @kernel(%arg0: i32, %arg1: memref<16x128xf32, #tpu.memory_space<vmem>>, %arg2: memref<128x512xf32, #tpu.memory_space<vmem>>, %arg3: memref<1x512xf32, #tpu.memory_space<vmem>>, %arg4: memref<32x128xf32, #tpu.memory_space<vmem>>, %arg5: memref<1x128xf32, #tpu.memory_space<vmem>>, %arg6: memref<1x128xf32, #tpu.memory_space<vmem>>, %arg7: memref<16x128xf32, #tpu.memory_space<vmem>>) attributes {dimension_semantics = [#tpu.dimension_semantics<parallel>], iteration_bounds = array<i64: 1>, scalar_prefetch = 0 : i64, scratch_operands = 0 : i64, tpu.core_type = #tpu.core_type<tc>, window_params = [{transform_indices = @transform_0, window_bounds = array<i64: 16, 128>}, {pipeline_mode = #tpu.pipeline_mode<synchronous>, transform_indices = @transform_1, window_bounds = array<i64: 128, 512>}, {pipeline_mode = #tpu.pipeline_mode<synchronous>, transform_indices = @transform_2, window_bounds = array<i64: 1, 512>}, {pipeline_mode = #tpu.pipeline_mode<synchronous>, transform_indices = @transform_3, window_bounds = array<i64: 32, 128>}, {pipeline_mode = #tpu.pipeline_mode<synchronous>, transform_indices = @transform_4, window_bounds = array<i64: 1, 128>}, {pipeline_mode = #tpu.pipeline_mode<synchronous>, transform_indices = @transform_5, window_bounds = array<i64: 1, 128>}, {transform_indices = @transform_6, window_bounds = array<i64: 16, 128>}]} {
    %c0 = arith.constant 0 : index
    %c0_0 = arith.constant 0 : index
    %0 = vector.load %arg1[%c0, %c0_0] : memref<16x128xf32, #tpu.memory_space<vmem>>, vector<16x128xf32>
    %c0_1 = arith.constant 0 : index
    %c0_2 = arith.constant 0 : index
    %1 = vector.load %arg2[%c0_1, %c0_2] : memref<128x512xf32, #tpu.memory_space<vmem>>, vector<128x512xf32>
    %cst = arith.constant dense<0.000000e+00> : vector<16x512xf32>
    %2 = tpu.matmul %0, %1, %cst {dimension_numbers = #tpu.dot_dimension_numbers<[1], [0], [0], [1], [0, 0, 1, 1], [], []>} : vector<16x128xf32>, vector<128x512xf32>, vector<16x512xf32> -> vector<16x512xf32>
    %c0_3 = arith.constant 0 : index
    %c0_4 = arith.constant 0 : index
    %3 = vector.load %arg3[%c0_3, %c0_4] : memref<1x512xf32, #tpu.memory_space<vmem>>, vector<1x512xf32>
    %4 = vector.broadcast %3 : vector<1x512xf32> to vector<16x512xf32>
    %5 = arith.addf %2, %4 : vector<16x512xf32>
    %6 = vector.extract_strided_slice %5 {offsets = [0, 0], sizes = [16, 128], strides = [1, 1]} : vector<16x512xf32> to vector<16x128xf32>
    %7 = vector.extract_strided_slice %5 {offsets = [0, 128], sizes = [16, 128], strides = [1, 1]} : vector<16x512xf32> to vector<16x128xf32>
    %8 = vector.extract_strided_slice %5 {offsets = [0, 256], sizes = [16, 128], strides = [1, 1]} : vector<16x512xf32> to vector<16x128xf32>
    %9 = vector.extract_strided_slice %5 {offsets = [0, 384], sizes = [16, 128], strides = [1, 1]} : vector<16x512xf32> to vector<16x128xf32>
    %10 = arith.addf %9, %0 : vector<16x128xf32>
    %c0_5 = arith.constant 0 : index
    %c0_6 = arith.constant 0 : index
    %11 = vector.load %arg4[%c0_5, %c0_6] : memref<32x128xf32, #tpu.memory_space<vmem>>, vector<32x128xf32>
    %c0_7 = arith.constant 0 : index
    %c0_8 = arith.constant 0 : index
    %12 = vector.load %arg5[%c0_7, %c0_8] : memref<1x128xf32, #tpu.memory_space<vmem>>, vector<1x128xf32>
    %c0_9 = arith.constant 0 : index
    %c0_10 = arith.constant 0 : index
    %13 = vector.load %arg6[%c0_9, %c0_10] : memref<1x128xf32, #tpu.memory_space<vmem>>, vector<1x128xf32>
    %14 = tpu.iota {dimensions = array<i32: 1>} : vector<1x128xi32>
    %c32_i32 = arith.constant 32 : i32
    %15 = vector.broadcast %c32_i32 : i32 to vector<1x128xi32>
    %16 = arith.cmpi slt, %14, %15 : vector<1x128xi32>
    %17 = arith.extui %16 : vector<1x128xi1> to vector<1x128xi32>
    %18 = arith.sitofp %17 : vector<1x128xi32> to vector<1x128xf32>
    %19 = vector.extract_strided_slice %6 {offsets = [0, 0], sizes = [8, 128], strides = [1, 1]} : vector<16x128xf32> to vector<8x128xf32>
    %20 = vector.extract_strided_slice %7 {offsets = [0, 0], sizes = [8, 128], strides = [1, 1]} : vector<16x128xf32> to vector<8x128xf32>
    %21 = vector.extract_strided_slice %8 {offsets = [0, 0], sizes = [8, 128], strides = [1, 1]} : vector<16x128xf32> to vector<8x128xf32>
    %22 = vector.extract_strided_slice %19 {offsets = [0, 0], sizes = [8, 8], strides = [1, 1]} : vector<8x128xf32> to vector<8x8xf32>
    %23 = vector.extract_strided_slice %20 {offsets = [0, 0], sizes = [8, 8], strides = [1, 1]} : vector<8x128xf32> to vector<8x8xf32>
    %24 = vector.extract_strided_slice %21 {offsets = [0, 0], sizes = [8, 8], strides = [1, 1]} : vector<8x128xf32> to vector<8x8xf32>
    %cst_11 = arith.constant dense<0.000000e+00> : vector<8x8xf32>
    %25 = tpu.matmul %22, %23, %cst_11 {dimension_numbers = #tpu.dot_dimension_numbers<[1], [1], [0], [0], [0, 0, 1, 0], [], []>} : vector<8x8xf32>, vector<8x8xf32>, vector<8x8xf32> -> vector<8x8xf32>
    %cst_12 = arith.constant dense<0xFF800000> : vector<8xf32>
    %26 = vector.multi_reduction <maximumf>, %25, %cst_12 [1] : vector<8x8xf32> to vector<8xf32>
    %27 = vector.shape_cast %26 : vector<8xf32> to vector<8x1xf32>
    %28 = vector.broadcast %27 : vector<8x1xf32> to vector<8x8xf32>
    %29 = arith.subf %25, %28 : vector<8x8xf32>
    %30 = math.exp %29 : vector<8x8xf32>
    %cst_13 = arith.constant dense<0.000000e+00> : vector<8xf32>
    %31 = vector.multi_reduction <add>, %30, %cst_13 [1] : vector<8x8xf32> to vector<8xf32>
    %32 = vector.shape_cast %31 : vector<8xf32> to vector<8x1xf32>
    %33 = vector.broadcast %32 : vector<8x1xf32> to vector<8x8xf32>
    %34 = arith.divf %30, %33 : vector<8x8xf32>
    %cst_14 = arith.constant dense<0.000000e+00> : vector<8x8xf32>
    %35 = tpu.matmul %34, %24, %cst_14 {dimension_numbers = #tpu.dot_dimension_numbers<[1], [0], [0], [1], [0, 0, 1, 1], [], []>} : vector<8x8xf32>, vector<8x8xf32>, vector<8x8xf32> -> vector<8x8xf32>
    %36 = vector.extract_strided_slice %19 {offsets = [0, 8], sizes = [8, 8], strides = [1, 1]} : vector<8x128xf32> to vector<8x8xf32>
    %37 = vector.extract_strided_slice %20 {offsets = [0, 8], sizes = [8, 8], strides = [1, 1]} : vector<8x128xf32> to vector<8x8xf32>
    %38 = vector.extract_strided_slice %21 {offsets = [0, 8], sizes = [8, 8], strides = [1, 1]} : vector<8x128xf32> to vector<8x8xf32>
    %cst_15 = arith.constant dense<0.000000e+00> : vector<8x8xf32>
    %39 = tpu.matmul %36, %37, %cst_15 {dimension_numbers = #tpu.dot_dimension_numbers<[1], [1], [0], [0], [0, 0, 1, 0], [], []>} : vector<8x8xf32>, vector<8x8xf32>, vector<8x8xf32> -> vector<8x8xf32>
    %cst_16 = arith.constant dense<0xFF800000> : vector<8xf32>
    %40 = vector.multi_reduction <maximumf>, %39, %cst_16 [1] : vector<8x8xf32> to vector<8xf32>
    %41 = vector.shape_cast %40 : vector<8xf32> to vector<8x1xf32>
    %42 = vector.broadcast %41 : vector<8x1xf32> to vector<8x8xf32>
    %43 = arith.subf %39, %42 : vector<8x8xf32>
    %44 = math.exp %43 : vector<8x8xf32>
    %cst_17 = arith.constant dense<0.000000e+00> : vector<8xf32>
    %45 = vector.multi_reduction <add>, %44, %cst_17 [1] : vector<8x8xf32> to vector<8xf32>
    %46 = vector.shape_cast %45 : vector<8xf32> to vector<8x1xf32>
    %47 = vector.broadcast %46 : vector<8x1xf32> to vector<8x8xf32>
    %48 = arith.divf %44, %47 : vector<8x8xf32>
    %cst_18 = arith.constant dense<0.000000e+00> : vector<8x8xf32>
    %49 = tpu.matmul %48, %38, %cst_18 {dimension_numbers = #tpu.dot_dimension_numbers<[1], [0], [0], [1], [0, 0, 1, 1], [], []>} : vector<8x8xf32>, vector<8x8xf32>, vector<8x8xf32> -> vector<8x8xf32>
    %50 = vector.extract_strided_slice %19 {offsets = [0, 16], sizes = [8, 8], strides = [1, 1]} : vector<8x128xf32> to vector<8x8xf32>
    %51 = vector.extract_strided_slice %20 {offsets = [0, 16], sizes = [8, 8], strides = [1, 1]} : vector<8x128xf32> to vector<8x8xf32>
    %52 = vector.extract_strided_slice %21 {offsets = [0, 16], sizes = [8, 8], strides = [1, 1]} : vector<8x128xf32> to vector<8x8xf32>
    %cst_19 = arith.constant dense<0.000000e+00> : vector<8x8xf32>
    %53 = tpu.matmul %50, %51, %cst_19 {dimension_numbers = #tpu.dot_dimension_numbers<[1], [1], [0], [0], [0, 0, 1, 0], [], []>} : vector<8x8xf32>, vector<8x8xf32>, vector<8x8xf32> -> vector<8x8xf32>
    %cst_20 = arith.constant dense<0xFF800000> : vector<8xf32>
    %54 = vector.multi_reduction <maximumf>, %53, %cst_20 [1] : vector<8x8xf32> to vector<8xf32>
    %55 = vector.shape_cast %54 : vector<8xf32> to vector<8x1xf32>
    %56 = vector.broadcast %55 : vector<8x1xf32> to vector<8x8xf32>
    %57 = arith.subf %53, %56 : vector<8x8xf32>
    %58 = math.exp %57 : vector<8x8xf32>
    %cst_21 = arith.constant dense<0.000000e+00> : vector<8xf32>
    %59 = vector.multi_reduction <add>, %58, %cst_21 [1] : vector<8x8xf32> to vector<8xf32>
    %60 = vector.shape_cast %59 : vector<8xf32> to vector<8x1xf32>
    %61 = vector.broadcast %60 : vector<8x1xf32> to vector<8x8xf32>
    %62 = arith.divf %58, %61 : vector<8x8xf32>
    %cst_22 = arith.constant dense<0.000000e+00> : vector<8x8xf32>
    %63 = tpu.matmul %62, %52, %cst_22 {dimension_numbers = #tpu.dot_dimension_numbers<[1], [0], [0], [1], [0, 0, 1, 1], [], []>} : vector<8x8xf32>, vector<8x8xf32>, vector<8x8xf32> -> vector<8x8xf32>
    %64 = vector.extract_strided_slice %19 {offsets = [0, 24], sizes = [8, 8], strides = [1, 1]} : vector<8x128xf32> to vector<8x8xf32>
    %65 = vector.extract_strided_slice %20 {offsets = [0, 24], sizes = [8, 8], strides = [1, 1]} : vector<8x128xf32> to vector<8x8xf32>
    %66 = vector.extract_strided_slice %21 {offsets = [0, 24], sizes = [8, 8], strides = [1, 1]} : vector<8x128xf32> to vector<8x8xf32>
    %cst_23 = arith.constant dense<0.000000e+00> : vector<8x8xf32>
    %67 = tpu.matmul %64, %65, %cst_23 {dimension_numbers = #tpu.dot_dimension_numbers<[1], [1], [0], [0], [0, 0, 1, 0], [], []>} : vector<8x8xf32>, vector<8x8xf32>, vector<8x8xf32> -> vector<8x8xf32>
    %cst_24 = arith.constant dense<0xFF800000> : vector<8xf32>
    %68 = vector.multi_reduction <maximumf>, %67, %cst_24 [1] : vector<8x8xf32> to vector<8xf32>
    %69 = vector.shape_cast %68 : vector<8xf32> to vector<8x1xf32>
    %70 = vector.broadcast %69 : vector<8x1xf32> to vector<8x8xf32>
    %71 = arith.subf %67, %70 : vector<8x8xf32>
    %72 = math.exp %71 : vector<8x8xf32>
    %cst_25 = arith.constant dense<0.000000e+00> : vector<8xf32>
    %73 = vector.multi_reduction <add>, %72, %cst_25 [1] : vector<8x8xf32> to vector<8xf32>
    %74 = vector.shape_cast %73 : vector<8xf32> to vector<8x1xf32>
    %75 = vector.broadcast %74 : vector<8x1xf32> to vector<8x8xf32>
    %76 = arith.divf %72, %75 : vector<8x8xf32>
    %cst_26 = arith.constant dense<0.000000e+00> : vector<8x8xf32>
    %77 = tpu.matmul %76, %66, %cst_26 {dimension_numbers = #tpu.dot_dimension_numbers<[1], [0], [0], [1], [0, 0, 1, 1], [], []>} : vector<8x8xf32>, vector<8x8xf32>, vector<8x8xf32> -> vector<8x8xf32>
    %78 = tpu.concatenate %35, %49, %63, %77 in 1 : vector<8x8xf32>, vector<8x8xf32>, vector<8x8xf32>, vector<8x8xf32> -> vector<8x32xf32>
    %79 = vector.extract_strided_slice %10 {offsets = [0, 0], sizes = [8, 128], strides = [1, 1]} : vector<16x128xf32> to vector<8x128xf32>
    %cst_27 = arith.constant dense<0.000000e+00> : vector<8x128xf32>
    %80 = tpu.matmul %78, %11, %cst_27 {dimension_numbers = #tpu.dot_dimension_numbers<[1], [0], [0], [1], [0, 0, 1, 1], [], []>} : vector<8x32xf32>, vector<32x128xf32>, vector<8x128xf32> -> vector<8x128xf32>
    %81 = arith.addf %79, %80 : vector<8x128xf32>
    %cst_28 = arith.constant dense<0.000000e+00> : vector<8xf32>
    %82 = vector.multi_reduction <add>, %81, %cst_28 [1] : vector<8x128xf32> to vector<8xf32>
    %83 = vector.shape_cast %82 : vector<8xf32> to vector<8x1xf32>
    %cst_29 = arith.constant 3.125000e-02 : f32
    %84 = vector.broadcast %cst_29 : f32 to vector<8x1xf32>
    %85 = arith.mulf %83, %84 : vector<8x1xf32>
    %86 = vector.broadcast %85 : vector<8x1xf32> to vector<8x128xf32>
    %87 = arith.subf %81, %86 : vector<8x128xf32>
    %88 = vector.broadcast %18 : vector<1x128xf32> to vector<8x128xf32>
    %89 = arith.mulf %87, %88 : vector<8x128xf32>
    %90 = arith.mulf %89, %89 : vector<8x128xf32>
    %cst_30 = arith.constant dense<0.000000e+00> : vector<8xf32>
    %91 = vector.multi_reduction <add>, %90, %cst_30 [1] : vector<8x128xf32> to vector<8xf32>
    %92 = vector.shape_cast %91 : vector<8xf32> to vector<8x1xf32>
    %cst_31 = arith.constant 3.125000e-02 : f32
    %93 = vector.broadcast %cst_31 : f32 to vector<8x1xf32>
    %94 = arith.mulf %92, %93 : vector<8x1xf32>
    %cst_32 = arith.constant 9.99999974E-6 : f32
    %95 = vector.broadcast %cst_32 : f32 to vector<8x1xf32>
    %96 = arith.addf %94, %95 : vector<8x1xf32>
    %97 = math.rsqrt %96 : vector<8x1xf32>
    %98 = vector.broadcast %97 : vector<8x1xf32> to vector<8x128xf32>
    %99 = arith.mulf %89, %98 : vector<8x128xf32>
    %100 = vector.broadcast %12 : vector<1x128xf32> to vector<8x128xf32>
    %101 = arith.mulf %99, %100 : vector<8x128xf32>
    %102 = vector.broadcast %13 : vector<1x128xf32> to vector<8x128xf32>
    %103 = arith.addf %101, %102 : vector<8x128xf32>
    %c0_33 = arith.constant 0 : index
    %c0_34 = arith.constant 0 : index
    %104 = vector.load %arg7[%c0_33, %c0_34] : memref<16x128xf32, #tpu.memory_space<vmem>>, vector<8x128xf32>
    tpu.vector_store %arg7[%c0_33, %c0_34], %103 {strides = array<i32>} : memref<16x128xf32, #tpu.memory_space<vmem>>, vector<8x128xf32>,
    %105 = vector.extract_strided_slice %6 {offsets = [8, 0], sizes = [8, 128], strides = [1, 1]} : vector<16x128xf32> to vector<8x128xf32>
    %106 = vector.extract_strided_slice %7 {offsets = [8, 0], sizes = [8, 128], strides = [1, 1]} : vector<16x128xf32> to vector<8x128xf32>
    %107 = vector.extract_strided_slice %8 {offsets = [8, 0], sizes = [8, 128], strides = [1, 1]} : vector<16x128xf32> to vector<8x128xf32>
    %108 = vector.extract_strided_slice %105 {offsets = [0, 0], sizes = [8, 8], strides = [1, 1]} : vector<8x128xf32> to vector<8x8xf32>
    %109 = vector.extract_strided_slice %106 {offsets = [0, 0], sizes = [8, 8], strides = [1, 1]} : vector<8x128xf32> to vector<8x8xf32>
    %110 = vector.extract_strided_slice %107 {offsets = [0, 0], sizes = [8, 8], strides = [1, 1]} : vector<8x128xf32> to vector<8x8xf32>
    %cst_35 = arith.constant dense<0.000000e+00> : vector<8x8xf32>
    %111 = tpu.matmul %108, %109, %cst_35 {dimension_numbers = #tpu.dot_dimension_numbers<[1], [1], [0], [0], [0, 0, 1, 0], [], []>} : vector<8x8xf32>, vector<8x8xf32>, vector<8x8xf32> -> vector<8x8xf32>
    %cst_36 = arith.constant dense<0xFF800000> : vector<8xf32>
    %112 = vector.multi_reduction <maximumf>, %111, %cst_36 [1] : vector<8x8xf32> to vector<8xf32>
    %113 = vector.shape_cast %112 : vector<8xf32> to vector<8x1xf32>
    %114 = vector.broadcast %113 : vector<8x1xf32> to vector<8x8xf32>
    %115 = arith.subf %111, %114 : vector<8x8xf32>
    %116 = math.exp %115 : vector<8x8xf32>
    %cst_37 = arith.constant dense<0.000000e+00> : vector<8xf32>
    %117 = vector.multi_reduction <add>, %116, %cst_37 [1] : vector<8x8xf32> to vector<8xf32>
    %118 = vector.shape_cast %117 : vector<8xf32> to vector<8x1xf32>
    %119 = vector.broadcast %118 : vector<8x1xf32> to vector<8x8xf32>
    %120 = arith.divf %116, %119 : vector<8x8xf32>
    %cst_38 = arith.constant dense<0.000000e+00> : vector<8x8xf32>
    %121 = tpu.matmul %120, %110, %cst_38 {dimension_numbers = #tpu.dot_dimension_numbers<[1], [0], [0], [1], [0, 0, 1, 1], [], []>} : vector<8x8xf32>, vector<8x8xf32>, vector<8x8xf32> -> vector<8x8xf32>
    %122 = vector.extract_strided_slice %105 {offsets = [0, 8], sizes = [8, 8], strides = [1, 1]} : vector<8x128xf32> to vector<8x8xf32>
    %123 = vector.extract_strided_slice %106 {offsets = [0, 8], sizes = [8, 8], strides = [1, 1]} : vector<8x128xf32> to vector<8x8xf32>
    %124 = vector.extract_strided_slice %107 {offsets = [0, 8], sizes = [8, 8], strides = [1, 1]} : vector<8x128xf32> to vector<8x8xf32>
    %cst_39 = arith.constant dense<0.000000e+00> : vector<8x8xf32>
    %125 = tpu.matmul %122, %123, %cst_39 {dimension_numbers = #tpu.dot_dimension_numbers<[1], [1], [0], [0], [0, 0, 1, 0], [], []>} : vector<8x8xf32>, vector<8x8xf32>, vector<8x8xf32> -> vector<8x8xf32>
    %cst_40 = arith.constant dense<0xFF800000> : vector<8xf32>
    %126 = vector.multi_reduction <maximumf>, %125, %cst_40 [1] : vector<8x8xf32> to vector<8xf32>
    %127 = vector.shape_cast %126 : vector<8xf32> to vector<8x1xf32>
    %128 = vector.broadcast %127 : vector<8x1xf32> to vector<8x8xf32>
    %129 = arith.subf %125, %128 : vector<8x8xf32>
    %130 = math.exp %129 : vector<8x8xf32>
    %cst_41 = arith.constant dense<0.000000e+00> : vector<8xf32>
    %131 = vector.multi_reduction <add>, %130, %cst_41 [1] : vector<8x8xf32> to vector<8xf32>
    %132 = vector.shape_cast %131 : vector<8xf32> to vector<8x1xf32>
    %133 = vector.broadcast %132 : vector<8x1xf32> to vector<8x8xf32>
    %134 = arith.divf %130, %133 : vector<8x8xf32>
    %cst_42 = arith.constant dense<0.000000e+00> : vector<8x8xf32>
    %135 = tpu.matmul %134, %124, %cst_42 {dimension_numbers = #tpu.dot_dimension_numbers<[1], [0], [0], [1], [0, 0, 1, 1], [], []>} : vector<8x8xf32>, vector<8x8xf32>, vector<8x8xf32> -> vector<8x8xf32>
    %136 = vector.extract_strided_slice %105 {offsets = [0, 16], sizes = [8, 8], strides = [1, 1]} : vector<8x128xf32> to vector<8x8xf32>
    %137 = vector.extract_strided_slice %106 {offsets = [0, 16], sizes = [8, 8], strides = [1, 1]} : vector<8x128xf32> to vector<8x8xf32>
    %138 = vector.extract_strided_slice %107 {offsets = [0, 16], sizes = [8, 8], strides = [1, 1]} : vector<8x128xf32> to vector<8x8xf32>
    %cst_43 = arith.constant dense<0.000000e+00> : vector<8x8xf32>
    %139 = tpu.matmul %136, %137, %cst_43 {dimension_numbers = #tpu.dot_dimension_numbers<[1], [1], [0], [0], [0, 0, 1, 0], [], []>} : vector<8x8xf32>, vector<8x8xf32>, vector<8x8xf32> -> vector<8x8xf32>
    %cst_44 = arith.constant dense<0xFF800000> : vector<8xf32>
    %140 = vector.multi_reduction <maximumf>, %139, %cst_44 [1] : vector<8x8xf32> to vector<8xf32>
    %141 = vector.shape_cast %140 : vector<8xf32> to vector<8x1xf32>
    %142 = vector.broadcast %141 : vector<8x1xf32> to vector<8x8xf32>
    %143 = arith.subf %139, %142 : vector<8x8xf32>
    %144 = math.exp %143 : vector<8x8xf32>
    %cst_45 = arith.constant dense<0.000000e+00> : vector<8xf32>
    %145 = vector.multi_reduction <add>, %144, %cst_45 [1] : vector<8x8xf32> to vector<8xf32>
    %146 = vector.shape_cast %145 : vector<8xf32> to vector<8x1xf32>
    %147 = vector.broadcast %146 : vector<8x1xf32> to vector<8x8xf32>
    %148 = arith.divf %144, %147 : vector<8x8xf32>
    %cst_46 = arith.constant dense<0.000000e+00> : vector<8x8xf32>
    %149 = tpu.matmul %148, %138, %cst_46 {dimension_numbers = #tpu.dot_dimension_numbers<[1], [0], [0], [1], [0, 0, 1, 1], [], []>} : vector<8x8xf32>, vector<8x8xf32>, vector<8x8xf32> -> vector<8x8xf32>
    %150 = vector.extract_strided_slice %105 {offsets = [0, 24], sizes = [8, 8], strides = [1, 1]} : vector<8x128xf32> to vector<8x8xf32>
    %151 = vector.extract_strided_slice %106 {offsets = [0, 24], sizes = [8, 8], strides = [1, 1]} : vector<8x128xf32> to vector<8x8xf32>
    %152 = vector.extract_strided_slice %107 {offsets = [0, 24], sizes = [8, 8], strides = [1, 1]} : vector<8x128xf32> to vector<8x8xf32>
    %cst_47 = arith.constant dense<0.000000e+00> : vector<8x8xf32>
    %153 = tpu.matmul %150, %151, %cst_47 {dimension_numbers = #tpu.dot_dimension_numbers<[1], [1], [0], [0], [0, 0, 1, 0], [], []>} : vector<8x8xf32>, vector<8x8xf32>, vector<8x8xf32> -> vector<8x8xf32>
    %cst_48 = arith.constant dense<0xFF800000> : vector<8xf32>
    %154 = vector.multi_reduction <maximumf>, %153, %cst_48 [1] : vector<8x8xf32> to vector<8xf32>
    %155 = vector.shape_cast %154 : vector<8xf32> to vector<8x1xf32>
    %156 = vector.broadcast %155 : vector<8x1xf32> to vector<8x8xf32>
    %157 = arith.subf %153, %156 : vector<8x8xf32>
    %158 = math.exp %157 : vector<8x8xf32>
    %cst_49 = arith.constant dense<0.000000e+00> : vector<8xf32>
    %159 = vector.multi_reduction <add>, %158, %cst_49 [1] : vector<8x8xf32> to vector<8xf32>
    %160 = vector.shape_cast %159 : vector<8xf32> to vector<8x1xf32>
    %161 = vector.broadcast %160 : vector<8x1xf32> to vector<8x8xf32>
    %162 = arith.divf %158, %161 : vector<8x8xf32>
    %cst_50 = arith.constant dense<0.000000e+00> : vector<8x8xf32>
    %163 = tpu.matmul %162, %152, %cst_50 {dimension_numbers = #tpu.dot_dimension_numbers<[1], [0], [0], [1], [0, 0, 1, 1], [], []>} : vector<8x8xf32>, vector<8x8xf32>, vector<8x8xf32> -> vector<8x8xf32>
    %164 = tpu.concatenate %121, %135, %149, %163 in 1 : vector<8x8xf32>, vector<8x8xf32>, vector<8x8xf32>, vector<8x8xf32> -> vector<8x32xf32>
    %165 = vector.extract_strided_slice %10 {offsets = [8, 0], sizes = [8, 128], strides = [1, 1]} : vector<16x128xf32> to vector<8x128xf32>
    %cst_51 = arith.constant dense<0.000000e+00> : vector<8x128xf32>
    %166 = tpu.matmul %164, %11, %cst_51 {dimension_numbers = #tpu.dot_dimension_numbers<[1], [0], [0], [1], [0, 0, 1, 1], [], []>} : vector<8x32xf32>, vector<32x128xf32>, vector<8x128xf32> -> vector<8x128xf32>
    %167 = arith.addf %165, %166 : vector<8x128xf32>
    %cst_52 = arith.constant dense<0.000000e+00> : vector<8xf32>
    %168 = vector.multi_reduction <add>, %167, %cst_52 [1] : vector<8x128xf32> to vector<8xf32>
    %169 = vector.shape_cast %168 : vector<8xf32> to vector<8x1xf32>
    %cst_53 = arith.constant 3.125000e-02 : f32
    %170 = vector.broadcast %cst_53 : f32 to vector<8x1xf32>
    %171 = arith.mulf %169, %170 : vector<8x1xf32>
    %172 = vector.broadcast %171 : vector<8x1xf32> to vector<8x128xf32>
    %173 = arith.subf %167, %172 : vector<8x128xf32>
    %174 = vector.broadcast %18 : vector<1x128xf32> to vector<8x128xf32>
    %175 = arith.mulf %173, %174 : vector<8x128xf32>
    %176 = arith.mulf %175, %175 : vector<8x128xf32>
    %cst_54 = arith.constant dense<0.000000e+00> : vector<8xf32>
    %177 = vector.multi_reduction <add>, %176, %cst_54 [1] : vector<8x128xf32> to vector<8xf32>
    %178 = vector.shape_cast %177 : vector<8xf32> to vector<8x1xf32>
    %cst_55 = arith.constant 3.125000e-02 : f32
    %179 = vector.broadcast %cst_55 : f32 to vector<8x1xf32>
    %180 = arith.mulf %178, %179 : vector<8x1xf32>
    %cst_56 = arith.constant 9.99999974E-6 : f32
    %181 = vector.broadcast %cst_56 : f32 to vector<8x1xf32>
    %182 = arith.addf %180, %181 : vector<8x1xf32>
    %183 = math.rsqrt %182 : vector<8x1xf32>
    %184 = vector.broadcast %183 : vector<8x1xf32> to vector<8x128xf32>
    %185 = arith.mulf %175, %184 : vector<8x128xf32>
    %186 = vector.broadcast %12 : vector<1x128xf32> to vector<8x128xf32>
    %187 = arith.mulf %185, %186 : vector<8x128xf32>
    %188 = vector.broadcast %13 : vector<1x128xf32> to vector<8x128xf32>
    %189 = arith.addf %187, %188 : vector<8x128xf32>
    %c8 = arith.constant 8 : index
    %c0_57 = arith.constant 0 : index
    %190 = vector.load %arg7[%c8, %c0_57] : memref<16x128xf32, #tpu.memory_space<vmem>>, vector<8x128xf32>
    tpu.vector_store %arg7[%c8, %c0_57], %189 {strides = array<i32>} : memref<16x128xf32, #tpu.memory_space<vmem>>, vector<8x128xf32>,
    return
  }
  func.func @transform_0(%arg0: i32) -> (i32, i32) {
    %c0_i32 = arith.constant 0 : i32
    %c0_i32_0 = arith.constant 0 : i32
    return %arg0, %c0_i32 : i32, i32
  }
  func.func @transform_1(%arg0: i32) -> (i32, i32) {
    %c0_i32 = arith.constant 0 : i32
    %c0_i32_0 = arith.constant 0 : i32
    %c0_i32_1 = arith.constant 0 : i32
    return %c0_i32, %c0_i32_0 : i32, i32
  }
  func.func @transform_2(%arg0: i32) -> (i32, i32) {
    %c0_i32 = arith.constant 0 : i32
    %c0_i32_0 = arith.constant 0 : i32
    %c0_i32_1 = arith.constant 0 : i32
    return %c0_i32, %c0_i32_0 : i32, i32
  }
  func.func @transform_3(%arg0: i32) -> (i32, i32) {
    %c0_i32 = arith.constant 0 : i32
    %c0_i32_0 = arith.constant 0 : i32
    %c0_i32_1 = arith.constant 0 : i32
    return %c0_i32, %c0_i32_0 : i32, i32
  }
  func.func @transform_4(%arg0: i32) -> (i32, i32) {
    %c0_i32 = arith.constant 0 : i32
    %c0_i32_0 = arith.constant 0 : i32
    %c0_i32_1 = arith.constant 0 : i32
    return %c0_i32, %c0_i32_0 : i32, i32
  }
  func.func @transform_5(%arg0: i32) -> (i32, i32) {
    %c0_i32 = arith.constant 0 : i32
    %c0_i32_0 = arith.constant 0 : i32
    %c0_i32_1 = arith.constant 0 : i32
    return %c0_i32, %c0_i32_0 : i32, i32
  }
  func.func @transform_6(%arg0: i32) -> (i32, i32) {
    %c0_i32 = arith.constant 0 : i32
    %c0_i32_0 = arith.constant 0 : i32
    return %arg0, %c0_i32 : i32, i32
  }
}

module attributes {stable_mosaic.version = 11 : i64} {
  func.func @kernel(%arg0: i32, %arg1: memref<16x128xf32, #tpu.memory_space<vmem>>, %arg2: memref<128x512xf32, #tpu.memory_space<vmem>>, %arg3: memref<1x512xf32, #tpu.memory_space<vmem>>, %arg4: memref<32x128xf32, #tpu.memory_space<vmem>>, %arg5: memref<1x128xf32, #tpu.memory_space<vmem>>, %arg6: memref<1x128xf32, #tpu.memory_space<vmem>>, %arg7: memref<16x128xf32, #tpu.memory_space<vmem>>) attributes {dimension_semantics = [#tpu.dimension_semantics<parallel>], iteration_bounds = array<i64: 1>, scalar_prefetch = 0 : i64, scratch_operands = 0 : i64, tpu.core_type = #tpu.core_type<tc>, window_params = [{transform_indices = @transform_0, window_bounds = array<i64: 16, 128>}, {pipeline_mode = #tpu.pipeline_mode<synchronous>, transform_indices = @transform_1, window_bounds = array<i64: 128, 512>}, {pipeline_mode = #tpu.pipeline_mode<synchronous>, transform_indices = @transform_2, window_bounds = array<i64: 1, 512>}, {pipeline_mode = #tpu.pipeline_mode<synchronous>, transform_indices = @transform_3, window_bounds = array<i64: 32, 128>}, {pipeline_mode = #tpu.pipeline_mode<synchronous>, transform_indices = @transform_4, window_bounds = array<i64: 1, 128>}, {pipeline_mode = #tpu.pipeline_mode<synchronous>, transform_indices = @transform_5, window_bounds = array<i64: 1, 128>}, {transform_indices = @transform_6, window_bounds = array<i64: 16, 128>}]} {
    %c0 = arith.constant 0 : index
    %c0_0 = arith.constant 0 : index
    %0 = vector.load %arg1[%c0, %c0_0] : memref<16x128xf32, #tpu.memory_space<vmem>>, vector<16x128xf32>
    %c0_1 = arith.constant 0 : index
    %c0_2 = arith.constant 0 : index
    %1 = vector.load %arg2[%c0_1, %c0_2] : memref<128x512xf32, #tpu.memory_space<vmem>>, vector<128x512xf32>
    %cst = arith.constant dense<0.000000e+00> : vector<16x512xf32>
    %2 = tpu.matmul %0, %1, %cst {dimension_numbers = #tpu.dot_dimension_numbers<[1], [0], [0], [1], [0, 0, 1, 1], [], []>} : vector<16x128xf32>, vector<128x512xf32>, vector<16x512xf32> -> vector<16x512xf32>
    %c0_3 = arith.constant 0 : index
    %c0_4 = arith.constant 0 : index
    %3 = vector.load %arg3[%c0_3, %c0_4] : memref<1x512xf32, #tpu.memory_space<vmem>>, vector<1x512xf32>
    %4 = vector.broadcast %3 : vector<1x512xf32> to vector<16x512xf32>
    %5 = arith.addf %2, %4 : vector<16x512xf32>
    %6 = vector.extract_strided_slice %5 {offsets = [0, 0], sizes = [16, 128], strides = [1, 1]} : vector<16x512xf32> to vector<16x128xf32>
    %7 = vector.extract_strided_slice %5 {offsets = [0, 128], sizes = [16, 128], strides = [1, 1]} : vector<16x512xf32> to vector<16x128xf32>
    %8 = vector.extract_strided_slice %5 {offsets = [0, 256], sizes = [16, 128], strides = [1, 1]} : vector<16x512xf32> to vector<16x128xf32>
    %9 = vector.extract_strided_slice %5 {offsets = [0, 384], sizes = [16, 128], strides = [1, 1]} : vector<16x512xf32> to vector<16x128xf32>
    %10 = arith.addf %9, %0 : vector<16x128xf32>
    %c0_5 = arith.constant 0 : index
    %c0_6 = arith.constant 0 : index
    %11 = vector.load %arg4[%c0_5, %c0_6] : memref<32x128xf32, #tpu.memory_space<vmem>>, vector<32x128xf32>
    %c0_7 = arith.constant 0 : index
    %c0_8 = arith.constant 0 : index
    %12 = vector.load %arg5[%c0_7, %c0_8] : memref<1x128xf32, #tpu.memory_space<vmem>>, vector<1x128xf32>
    %c0_9 = arith.constant 0 : index
    %c0_10 = arith.constant 0 : index
    %13 = vector.load %arg6[%c0_9, %c0_10] : memref<1x128xf32, #tpu.memory_space<vmem>>, vector<1x128xf32>
    %14 = tpu.iota {dimensions = array<i32: 1>} : vector<1x128xi32>
    %c32_i32 = arith.constant 32 : i32
    %15 = vector.broadcast %c32_i32 : i32 to vector<1x128xi32>
    %16 = arith.cmpi slt, %14, %15 : vector<1x128xi32>
    %17 = arith.extui %16 : vector<1x128xi1> to vector<1x128xi32>
    %18 = arith.sitofp %17 : vector<1x128xi32> to vector<1x128xf32>
    %19 = vector.extract_strided_slice %6 {offsets = [0, 0], sizes = [8, 128], strides = [1, 1]} : vector<16x128xf32> to vector<8x128xf32>
    %20 = vector.extract_strided_slice %7 {offsets = [0, 0], sizes = [8, 128], strides = [1, 1]} : vector<16x128xf32> to vector<8x128xf32>
    %21 = vector.extract_strided_slice %8 {offsets = [0, 0], sizes = [8, 128], strides = [1, 1]} : vector<16x128xf32> to vector<8x128xf32>
    %22 = vector.extract_strided_slice %19 {offsets = [0, 0], sizes = [8, 8], strides = [1, 1]} : vector<8x128xf32> to vector<8x8xf32>
    %23 = vector.extract_strided_slice %20 {offsets = [0, 0], sizes = [8, 8], strides = [1, 1]} : vector<8x128xf32> to vector<8x8xf32>
    %24 = vector.extract_strided_slice %21 {offsets = [0, 0], sizes = [8, 8], strides = [1, 1]} : vector<8x128xf32> to vector<8x8xf32>
    %cst_11 = arith.constant dense<0.000000e+00> : vector<8x8xf32>
    %25 = tpu.matmul %22, %23, %cst_11 {dimension_numbers = #tpu.dot_dimension_numbers<[1], [1], [0], [0], [0, 0, 1, 0], [], []>} : vector<8x8xf32>, vector<8x8xf32>, vector<8x8xf32> -> vector<8x8xf32>
    %cst_12 = arith.constant dense<0xFF800000> : vector<8xf32>
    %26 = vector.multi_reduction <maximumf>, %25, %cst_12 [1] : vector<8x8xf32> to vector<8xf32>
    %27 = vector.shape_cast %26 : vector<8xf32> to vector<8x1xf32>
    %28 = vector.broadcast %27 : vector<8x1xf32> to vector<8x8xf32>
    %29 = arith.subf %25, %28 : vector<8x8xf32>
    %30 = math.exp %29 : vector<8x8xf32>
    %cst_13 = arith.constant dense<0.000000e+00> : vector<8xf32>
    %31 = vector.multi_reduction <add>, %30, %cst_13 [1] : vector<8x8xf32> to vector<8xf32>
    %32 = vector.shape_cast %31 : vector<8xf32> to vector<8x1xf32>
    %33 = vector.broadcast %32 : vector<8x1xf32> to vector<8x8xf32>
    %34 = arith.divf %30, %33 : vector<8x8xf32>
    %cst_14 = arith.constant dense<0.000000e+00> : vector<8x8xf32>
    %35 = tpu.matmul %34, %24, %cst_14 {dimension_numbers = #tpu.dot_dimension_numbers<[1], [0], [0], [1], [0, 0, 1, 1], [], []>} : vector<8x8xf32>, vector<8x8xf32>, vector<8x8xf32> -> vector<8x8xf32>
    %36 = vector.extract_strided_slice %19 {offsets = [0, 8], sizes = [8, 8], strides = [1, 1]} : vector<8x128xf32> to vector<8x8xf32>
    %37 = vector.extract_strided_slice %20 {offsets = [0, 8], sizes = [8, 8], strides = [1, 1]} : vector<8x128xf32> to vector<8x8xf32>
    %38 = vector.extract_strided_slice %21 {offsets = [0, 8], sizes = [8, 8], strides = [1, 1]} : vector<8x128xf32> to vector<8x8xf32>
    %cst_15 = arith.constant dense<0.000000e+00> : vector<8x8xf32>
    %39 = tpu.matmul %36, %37, %cst_15 {dimension_numbers = #tpu.dot_dimension_numbers<[1], [1], [0], [0], [0, 0, 1, 0], [], []>} : vector<8x8xf32>, vector<8x8xf32>, vector<8x8xf32> -> vector<8x8xf32>
    %cst_16 = arith.constant dense<0xFF800000> : vector<8xf32>
    %40 = vector.multi_reduction <maximumf>, %39, %cst_16 [1] : vector<8x8xf32> to vector<8xf32>
    %41 = vector.shape_cast %40 : vector<8xf32> to vector<8x1xf32>
    %42 = vector.broadcast %41 : vector<8x1xf32> to vector<8x8xf32>
    %43 = arith.subf %39, %42 : vector<8x8xf32>
    %44 = math.exp %43 : vector<8x8xf32>
    %cst_17 = arith.constant dense<0.000000e+00> : vector<8xf32>
    %45 = vector.multi_reduction <add>, %44, %cst_17 [1] : vector<8x8xf32> to vector<8xf32>
    %46 = vector.shape_cast %45 : vector<8xf32> to vector<8x1xf32>
    %47 = vector.broadcast %46 : vector<8x1xf32> to vector<8x8xf32>
    %48 = arith.divf %44, %47 : vector<8x8xf32>
    %cst_18 = arith.constant dense<0.000000e+00> : vector<8x8xf32>
    %49 = tpu.matmul %48, %38, %cst_18 {dimension_numbers = #tpu.dot_dimension_numbers<[1], [0], [0], [1], [0, 0, 1, 1], [], []>} : vector<8x8xf32>, vector<8x8xf32>, vector<8x8xf32> -> vector<8x8xf32>
    %50 = vector.extract_strided_slice %19 {offsets = [0, 16], sizes = [8, 8], strides = [1, 1]} : vector<8x128xf32> to vector<8x8xf32>
    %51 = vector.extract_strided_slice %20 {offsets = [0, 16], sizes = [8, 8], strides = [1, 1]} : vector<8x128xf32> to vector<8x8xf32>
    %52 = vector.extract_strided_slice %21 {offsets = [0, 16], sizes = [8, 8], strides = [1, 1]} : vector<8x128xf32> to vector<8x8xf32>
    %cst_19 = arith.constant dense<0.000000e+00> : vector<8x8xf32>
    %53 = tpu.matmul %50, %51, %cst_19 {dimension_numbers = #tpu.dot_dimension_numbers<[1], [1], [0], [0], [0, 0, 1, 0], [], []>} : vector<8x8xf32>, vector<8x8xf32>, vector<8x8xf32> -> vector<8x8xf32>
    %cst_20 = arith.constant dense<0xFF800000> : vector<8xf32>
    %54 = vector.multi_reduction <maximumf>, %53, %cst_20 [1] : vector<8x8xf32> to vector<8xf32>
    %55 = vector.shape_cast %54 : vector<8xf32> to vector<8x1xf32>
    %56 = vector.broadcast %55 : vector<8x1xf32> to vector<8x8xf32>
    %57 = arith.subf %53, %56 : vector<8x8xf32>
    %58 = math.exp %57 : vector<8x8xf32>
    %cst_21 = arith.constant dense<0.000000e+00> : vector<8xf32>
    %59 = vector.multi_reduction <add>, %58, %cst_21 [1] : vector<8x8xf32> to vector<8xf32>
    %60 = vector.shape_cast %59 : vector<8xf32> to vector<8x1xf32>
    %61 = vector.broadcast %60 : vector<8x1xf32> to vector<8x8xf32>
    %62 = arith.divf %58, %61 : vector<8x8xf32>
    %cst_22 = arith.constant dense<0.000000e+00> : vector<8x8xf32>
    %63 = tpu.matmul %62, %52, %cst_22 {dimension_numbers = #tpu.dot_dimension_numbers<[1], [0], [0], [1], [0, 0, 1, 1], [], []>} : vector<8x8xf32>, vector<8x8xf32>, vector<8x8xf32> -> vector<8x8xf32>
    %64 = vector.extract_strided_slice %19 {offsets = [0, 24], sizes = [8, 8], strides = [1, 1]} : vector<8x128xf32> to vector<8x8xf32>
    %65 = vector.extract_strided_slice %20 {offsets = [0, 24], sizes = [8, 8], strides = [1, 1]} : vector<8x128xf32> to vector<8x8xf32>
    %66 = vector.extract_strided_slice %21 {offsets = [0, 24], sizes = [8, 8], strides = [1, 1]} : vector<8x128xf32> to vector<8x8xf32>
    %cst_23 = arith.constant dense<0.000000e+00> : vector<8x8xf32>
    %67 = tpu.matmul %64, %65, %cst_23 {dimension_numbers = #tpu.dot_dimension_numbers<[1], [1], [0], [0], [0, 0, 1, 0], [], []>} : vector<8x8xf32>, vector<8x8xf32>, vector<8x8xf32> -> vector<8x8xf32>
    %cst_24 = arith.constant dense<0xFF800000> : vector<8xf32>
    %68 = vector.multi_reduction <maximumf>, %67, %cst_24 [1] : vector<8x8xf32> to vector<8xf32>
    %69 = vector.shape_cast %68 : vector<8xf32> to vector<8x1xf32>
    %70 = vector.broadcast %69 : vector<8x1xf32> to vector<8x8xf32>
    %71 = arith.subf %67, %70 : vector<8x8xf32>
    %72 = math.exp %71 : vector<8x8xf32>
    %cst_25 = arith.constant dense<0.000000e+00> : vector<8xf32>
    %73 = vector.multi_reduction <add>, %72, %cst_25 [1] : vector<8x8xf32> to vector<8xf32>
    %74 = vector.shape_cast %73 : vector<8xf32> to vector<8x1xf32>
    %75 = vector.broadcast %74 : vector<8x1xf32> to vector<8x8xf32>
    %76 = arith.divf %72, %75 : vector<8x8xf32>
    %cst_26 = arith.constant dense<0.000000e+00> : vector<8x8xf32>
    %77 = tpu.matmul %76, %66, %cst_26 {dimension_numbers = #tpu.dot_dimension_numbers<[1], [0], [0], [1], [0, 0, 1, 1], [], []>} : vector<8x8xf32>, vector<8x8xf32>, vector<8x8xf32> -> vector<8x8xf32>
    %78 = tpu.concatenate %35, %49, %63, %77 in 1 : vector<8x8xf32>, vector<8x8xf32>, vector<8x8xf32>, vector<8x8xf32> -> vector<8x32xf32>
    %79 = vector.extract_strided_slice %10 {offsets = [0, 0], sizes = [8, 128], strides = [1, 1]} : vector<16x128xf32> to vector<8x128xf32>
    %cst_27 = arith.constant dense<0.000000e+00> : vector<8x128xf32>
    %80 = tpu.matmul %78, %11, %cst_27 {dimension_numbers = #tpu.dot_dimension_numbers<[1], [0], [0], [1], [0, 0, 1, 1], [], []>} : vector<8x32xf32>, vector<32x128xf32>, vector<8x128xf32> -> vector<8x128xf32>
    %81 = arith.addf %79, %80 : vector<8x128xf32>
    %cst_28 = arith.constant dense<0.000000e+00> : vector<8xf32>
    %82 = vector.multi_reduction <add>, %81, %cst_28 [1] : vector<8x128xf32> to vector<8xf32>
    %83 = vector.shape_cast %82 : vector<8xf32> to vector<8x1xf32>
    %cst_29 = arith.constant 3.125000e-02 : f32
    %84 = vector.broadcast %cst_29 : f32 to vector<8x1xf32>
    %85 = arith.mulf %83, %84 : vector<8x1xf32>
    %86 = vector.broadcast %85 : vector<8x1xf32> to vector<8x128xf32>
    %87 = arith.subf %81, %86 : vector<8x128xf32>
    %88 = vector.broadcast %18 : vector<1x128xf32> to vector<8x128xf32>
    %89 = arith.mulf %87, %88 : vector<8x128xf32>
    %90 = arith.mulf %89, %89 : vector<8x128xf32>
    %cst_30 = arith.constant dense<0.000000e+00> : vector<8xf32>
    %91 = vector.multi_reduction <add>, %90, %cst_30 [1] : vector<8x128xf32> to vector<8xf32>
    %92 = vector.shape_cast %91 : vector<8xf32> to vector<8x1xf32>
    %cst_31 = arith.constant 3.125000e-02 : f32
    %93 = vector.broadcast %cst_31 : f32 to vector<8x1xf32>
    %94 = arith.mulf %92, %93 : vector<8x1xf32>
    %cst_32 = arith.constant 9.99999974E-6 : f32
    %95 = vector.broadcast %cst_32 : f32 to vector<8x1xf32>
    %96 = arith.addf %94, %95 : vector<8x1xf32>
    %97 = math.rsqrt %96 : vector<8x1xf32>
    %98 = vector.broadcast %97 : vector<8x1xf32> to vector<8x128xf32>
    %99 = arith.mulf %89, %98 : vector<8x128xf32>
    %100 = vector.broadcast %12 : vector<1x128xf32> to vector<8x128xf32>
    %101 = arith.mulf %99, %100 : vector<8x128xf32>
    %102 = vector.broadcast %13 : vector<1x128xf32> to vector<8x128xf32>
    %103 = arith.addf %101, %102 : vector<8x128xf32>
    %c0_33 = arith.constant 0 : index
    %c0_34 = arith.constant 0 : index
    %104 = vector.load %arg7[%c0_33, %c0_34] : memref<16x128xf32, #tpu.memory_space<vmem>>, vector<8x128xf32>
    tpu.vector_store %arg7[%c0_33, %c0_34], %103 {strides = array<i32>} : memref<16x128xf32, #tpu.memory_space<vmem>>, vector<8x128xf32>,
    %105 = vector.extract_strided_slice %6 {offsets = [8, 0], sizes = [8, 128], strides = [1, 1]} : vector<16x128xf32> to vector<8x128xf32>
    %106 = vector.extract_strided_slice %7 {offsets = [8, 0], sizes = [8, 128], strides = [1, 1]} : vector<16x128xf32> to vector<8x128xf32>
    %107 = vector.extract_strided_slice %8 {offsets = [8, 0], sizes = [8, 128], strides = [1, 1]} : vector<16x128xf32> to vector<8x128xf32>
    %108 = vector.extract_strided_slice %105 {offsets = [0, 0], sizes = [8, 8], strides = [1, 1]} : vector<8x128xf32> to vector<8x8xf32>
    %109 = vector.extract_strided_slice %106 {offsets = [0, 0], sizes = [8, 8], strides = [1, 1]} : vector<8x128xf32> to vector<8x8xf32>
    %110 = vector.extract_strided_slice %107 {offsets = [0, 0], sizes = [8, 8], strides = [1, 1]} : vector<8x128xf32> to vector<8x8xf32>
    %cst_35 = arith.constant dense<0.000000e+00> : vector<8x8xf32>
    %111 = tpu.matmul %108, %109, %cst_35 {dimension_numbers = #tpu.dot_dimension_numbers<[1], [1], [0], [0], [0, 0, 1, 0], [], []>} : vector<8x8xf32>, vector<8x8xf32>, vector<8x8xf32> -> vector<8x8xf32>
    %cst_36 = arith.constant dense<0xFF800000> : vector<8xf32>
    %112 = vector.multi_reduction <maximumf>, %111, %cst_36 [1] : vector<8x8xf32> to vector<8xf32>
    %113 = vector.shape_cast %112 : vector<8xf32> to vector<8x1xf32>
    %114 = vector.broadcast %113 : vector<8x1xf32> to vector<8x8xf32>
    %115 = arith.subf %111, %114 : vector<8x8xf32>
    %116 = math.exp %115 : vector<8x8xf32>
    %cst_37 = arith.constant dense<0.000000e+00> : vector<8xf32>
    %117 = vector.multi_reduction <add>, %116, %cst_37 [1] : vector<8x8xf32> to vector<8xf32>
    %118 = vector.shape_cast %117 : vector<8xf32> to vector<8x1xf32>
    %119 = vector.broadcast %118 : vector<8x1xf32> to vector<8x8xf32>
    %120 = arith.divf %116, %119 : vector<8x8xf32>
    %cst_38 = arith.constant dense<0.000000e+00> : vector<8x8xf32>
    %121 = tpu.matmul %120, %110, %cst_38 {dimension_numbers = #tpu.dot_dimension_numbers<[1], [0], [0], [1], [0, 0, 1, 1], [], []>} : vector<8x8xf32>, vector<8x8xf32>, vector<8x8xf32> -> vector<8x8xf32>
    %122 = vector.extract_strided_slice %105 {offsets = [0, 8], sizes = [8, 8], strides = [1, 1]} : vector<8x128xf32> to vector<8x8xf32>
    %123 = vector.extract_strided_slice %106 {offsets = [0, 8], sizes = [8, 8], strides = [1, 1]} : vector<8x128xf32> to vector<8x8xf32>
    %124 = vector.extract_strided_slice %107 {offsets = [0, 8], sizes = [8, 8], strides = [1, 1]} : vector<8x128xf32> to vector<8x8xf32>
    %cst_39 = arith.constant dense<0.000000e+00> : vector<8x8xf32>
    %125 = tpu.matmul %122, %123, %cst_39 {dimension_numbers = #tpu.dot_dimension_numbers<[1], [1], [0], [0], [0, 0, 1, 0], [], []>} : vector<8x8xf32>, vector<8x8xf32>, vector<8x8xf32> -> vector<8x8xf32>
    %cst_40 = arith.constant dense<0xFF800000> : vector<8xf32>
    %126 = vector.multi_reduction <maximumf>, %125, %cst_40 [1] : vector<8x8xf32> to vector<8xf32>
    %127 = vector.shape_cast %126 : vector<8xf32> to vector<8x1xf32>
    %128 = vector.broadcast %127 : vector<8x1xf32> to vector<8x8xf32>
    %129 = arith.subf %125, %128 : vector<8x8xf32>
    %130 = math.exp %129 : vector<8x8xf32>
    %cst_41 = arith.constant dense<0.000000e+00> : vector<8xf32>
    %131 = vector.multi_reduction <add>, %130, %cst_41 [1] : vector<8x8xf32> to vector<8xf32>
    %132 = vector.shape_cast %131 : vector<8xf32> to vector<8x1xf32>
    %133 = vector.broadcast %132 : vector<8x1xf32> to vector<8x8xf32>
    %134 = arith.divf %130, %133 : vector<8x8xf32>
    %cst_42 = arith.constant dense<0.000000e+00> : vector<8x8xf32>
    %135 = tpu.matmul %134, %124, %cst_42 {dimension_numbers = #tpu.dot_dimension_numbers<[1], [0], [0], [1], [0, 0, 1, 1], [], []>} : vector<8x8xf32>, vector<8x8xf32>, vector<8x8xf32> -> vector<8x8xf32>
    %136 = vector.extract_strided_slice %105 {offsets = [0, 16], sizes = [8, 8], strides = [1, 1]} : vector<8x128xf32> to vector<8x8xf32>
    %137 = vector.extract_strided_slice %106 {offsets = [0, 16], sizes = [8, 8], strides = [1, 1]} : vector<8x128xf32> to vector<8x8xf32>
    %138 = vector.extract_strided_slice %107 {offsets = [0, 16], sizes = [8, 8], strides = [1, 1]} : vector<8x128xf32> to vector<8x8xf32>
    %cst_43 = arith.constant dense<0.000000e+00> : vector<8x8xf32>
    %139 = tpu.matmul %136, %137, %cst_43 {dimension_numbers = #tpu.dot_dimension_numbers<[1], [1], [0], [0], [0, 0, 1, 0], [], []>} : vector<8x8xf32>, vector<8x8xf32>, vector<8x8xf32> -> vector<8x8xf32>
    %cst_44 = arith.constant dense<0xFF800000> : vector<8xf32>
    %140 = vector.multi_reduction <maximumf>, %139, %cst_44 [1] : vector<8x8xf32> to vector<8xf32>
    %141 = vector.shape_cast %140 : vector<8xf32> to vector<8x1xf32>
    %142 = vector.broadcast %141 : vector<8x1xf32> to vector<8x8xf32>
    %143 = arith.subf %139, %142 : vector<8x8xf32>
    %144 = math.exp %143 : vector<8x8xf32>
    %cst_45 = arith.constant dense<0.000000e+00> : vector<8xf32>
    %145 = vector.multi_reduction <add>, %144, %cst_45 [1] : vector<8x8xf32> to vector<8xf32>
    %146 = vector.shape_cast %145 : vector<8xf32> to vector<8x1xf32>
    %147 = vector.broadcast %146 : vector<8x1xf32> to vector<8x8xf32>
    %148 = arith.divf %144, %147 : vector<8x8xf32>
    %cst_46 = arith.constant dense<0.000000e+00> : vector<8x8xf32>
    %149 = tpu.matmul %148, %138, %cst_46 {dimension_numbers = #tpu.dot_dimension_numbers<[1], [0], [0], [1], [0, 0, 1, 1], [], []>} : vector<8x8xf32>, vector<8x8xf32>, vector<8x8xf32> -> vector<8x8xf32>
    %150 = vector.extract_strided_slice %105 {offsets = [0, 24], sizes = [8, 8], strides = [1, 1]} : vector<8x128xf32> to vector<8x8xf32>
    %151 = vector.extract_strided_slice %106 {offsets = [0, 24], sizes = [8, 8], strides = [1, 1]} : vector<8x128xf32> to vector<8x8xf32>
    %152 = vector.extract_strided_slice %107 {offsets = [0, 24], sizes = [8, 8], strides = [1, 1]} : vector<8x128xf32> to vector<8x8xf32>
    %cst_47 = arith.constant dense<0.000000e+00> : vector<8x8xf32>
    %153 = tpu.matmul %150, %151, %cst_47 {dimension_numbers = #tpu.dot_dimension_numbers<[1], [1], [0], [0], [0, 0, 1, 0], [], []>} : vector<8x8xf32>, vector<8x8xf32>, vector<8x8xf32> -> vector<8x8xf32>
    %cst_48 = arith.constant dense<0xFF800000> : vector<8xf32>
    %154 = vector.multi_reduction <maximumf>, %153, %cst_48 [1] : vector<8x8xf32> to vector<8xf32>
    %155 = vector.shape_cast %154 : vector<8xf32> to vector<8x1xf32>
    %156 = vector.broadcast %155 : vector<8x1xf32> to vector<8x8xf32>
    %157 = arith.subf %153, %156 : vector<8x8xf32>
    %158 = math.exp %157 : vector<8x8xf32>
    %cst_49 = arith.constant dense<0.000000e+00> : vector<8xf32>
    %159 = vector.multi_reduction <add>, %158, %cst_49 [1] : vector<8x8xf32> to vector<8xf32>
    %160 = vector.shape_cast %159 : vector<8xf32> to vector<8x1xf32>
    %161 = vector.broadcast %160 : vector<8x1xf32> to vector<8x8xf32>
    %162 = arith.divf %158, %161 : vector<8x8xf32>
    %cst_50 = arith.constant dense<0.000000e+00> : vector<8x8xf32>
    %163 = tpu.matmul %162, %152, %cst_50 {dimension_numbers = #tpu.dot_dimension_numbers<[1], [0], [0], [1], [0, 0, 1, 1], [], []>} : vector<8x8xf32>, vector<8x8xf32>, vector<8x8xf32> -> vector<8x8xf32>
    %164 = tpu.concatenate %121, %135, %149, %163 in 1 : vector<8x8xf32>, vector<8x8xf32>, vector<8x8xf32>, vector<8x8xf32> -> vector<8x32xf32>
    %165 = vector.extract_strided_slice %10 {offsets = [8, 0], sizes = [8, 128], strides = [1, 1]} : vector<16x128xf32> to vector<8x128xf32>
    %cst_51 = arith.constant dense<0.000000e+00> : vector<8x128xf32>
    %166 = tpu.matmul %164, %11, %cst_51 {dimension_numbers = #tpu.dot_dimension_numbers<[1], [0], [0], [1], [0, 0, 1, 1], [], []>} : vector<8x32xf32>, vector<32x128xf32>, vector<8x128xf32> -> vector<8x128xf32>
    %167 = arith.addf %165, %166 : vector<8x128xf32>
    %cst_52 = arith.constant dense<0.000000e+00> : vector<8xf32>
    %168 = vector.multi_reduction <add>, %167, %cst_52 [1] : vector<8x128xf32> to vector<8xf32>
    %169 = vector.shape_cast %168 : vector<8xf32> to vector<8x1xf32>
    %cst_53 = arith.constant 3.125000e-02 : f32
    %170 = vector.broadcast %cst_53 : f32 to vector<8x1xf32>
    %171 = arith.mulf %169, %170 : vector<8x1xf32>
    %172 = vector.broadcast %171 : vector<8x1xf32> to vector<8x128xf32>
    %173 = arith.subf %167, %172 : vector<8x128xf32>
    %174 = vector.broadcast %18 : vector<1x128xf32> to vector<8x128xf32>
    %175 = arith.mulf %173, %174 : vector<8x128xf32>
    %176 = arith.mulf %175, %175 : vector<8x128xf32>
    %cst_54 = arith.constant dense<0.000000e+00> : vector<8xf32>
    %177 = vector.multi_reduction <add>, %176, %cst_54 [1] : vector<8x128xf32> to vector<8xf32>
    %178 = vector.shape_cast %177 : vector<8xf32> to vector<8x1xf32>
    %cst_55 = arith.constant 3.125000e-02 : f32
    %179 = vector.broadcast %cst_55 : f32 to vector<8x1xf32>
    %180 = arith.mulf %178, %179 : vector<8x1xf32>
    %cst_56 = arith.constant 9.99999974E-6 : f32
    %181 = vector.broadcast %cst_56 : f32 to vector<8x1xf32>
    %182 = arith.addf %180, %181 : vector<8x1xf32>
    %183 = math.rsqrt %182 : vector<8x1xf32>
    %184 = vector.broadcast %183 : vector<8x1xf32> to vector<8x128xf32>
    %185 = arith.mulf %175, %184 : vector<8x128xf32>
    %186 = vector.broadcast %12 : vector<1x128xf32> to vector<8x128xf32>
    %187 = arith.mulf %185, %186 : vector<8x128xf32>
    %188 = vector.broadcast %13 : vector<1x128xf32> to vector<8x128xf32>
    %189 = arith.addf %187, %188 : vector<8x128xf32>
    %c8 = arith.constant 8 : index
    %c0_57 = arith.constant 0 : index
    %190 = vector.load %arg7[%c8, %c0_57] : memref<16x128xf32, #tpu.memory_space<vmem>>, vector<8x128xf32>
    tpu.vector_store %arg7[%c8, %c0_57], %189 {strides = array<i32>} : memref<16x128xf32, #tpu.memory_space<vmem>>, vector<8x128xf32>,
    return
  }
  func.func @transform_0(%arg0: i32) -> (i32, i32) {
    %c0_i32 = arith.constant 0 : i32
    %c0_i32_0 = arith.constant 0 : i32
    return %arg0, %c0_i32 : i32, i32
  }
  func.func @transform_1(%arg0: i32) -> (i32, i32) {
    %c0_i32 = arith.constant 0 : i32
    %c0_i32_0 = arith.constant 0 : i32
    %c0_i32_1 = arith.constant 0 : i32
    return %c0_i32, %c0_i32_0 : i32, i32
  }
  func.func @transform_2(%arg0: i32) -> (i32, i32) {
    %c0_i32 = arith.constant 0 : i32
    %c0_i32_0 = arith.constant 0 : i32
    %c0_i32_1 = arith.constant 0 : i32
    return %c0_i32, %c0_i32_0 : i32, i32
  }
  func.func @transform_3(%arg0: i32) -> (i32, i32) {
    %c0_i32 = arith.constant 0 : i32
    %c0_i32_0 = arith.constant 0 : i32
    %c0_i32_1 = arith.constant 0 : i32
    return %c0_i32, %c0_i32_0 : i32, i32
  }
  func.func @transform_4(%arg0: i32) -> (i32, i32) {
    %c0_i32 = arith.constant 0 : i32
    %c0_i32_0 = arith.constant 0 : i32
    %c0_i32_1 = arith.constant 0 : i32
    return %c0_i32, %c0_i32_0 : i32, i32
  }
  func.func @transform_5(%arg0: i32) -> (i32, i32) {
    %c0_i32 = arith.constant 0 : i32
    %c0_i32_0 = arith.constant 0 : i32
    %c0_i32_1 = arith.constant 0 : i32
    return %c0_i32, %c0_i32_0 : i32, i32
  }
  func.func @transform_6(%arg0: i32) -> (i32, i32) {
    %c0_i32 = arith.constant 0 : i32
    %c0_i32_0 = arith.constant 0 : i32
    return %arg0, %c0_i32 : i32, i32
  }
}

</mosaic_0001>

<bundles_post_ra>
// kernel: tpu_custom_call.1
= control target key start
LH: loop header
LB: loop body
LE: loop exit
PB: predicated region body
PF: predicated region fallthrough
CT: control target
= control target key end

     0   :  { %11 = vsyncpa [#allocation3], 0  ;;  %s2586_s0 = inlined_call_operand.hbm [shape: f32[16,128], index: 0, kind: input, shape index: {}]   ;;  %s2587_s1 = inlined_call_operand.hbm [shape: f32[128,512], index: 1, kind: input, shape index: {}]   ;;  %s2588_s2 = inlined_call_operand.vmem [shape: f32[1,512], index: 2, kind: input, shape index: {}]   ;;  %s2589_s3 = inlined_call_operand.hbm [shape: f32[32,128], index: 3, kind: input, shape index: {}]   ;;  %s2590_s4 = inlined_call_operand.vmem [shape: f32[1,128], index: 4, kind: input, shape index: {}]   ;;  %s2591_s5 = inlined_call_operand.vmem [shape: f32[1,128], index: 5, kind: input, shape index: {}]   ;;  %s2592_s6 = inlined_call_operand.hbm [shape: f32[16,128], index: 6, kind: output, shape index: {}]  }
   0x1   :  { %12 = vsyncpa [#allocation6], 0 }
   0x2   :  { %13 = vsyncpa [#allocation4], 0  ;;  %s2269_s21 = smov [#allocation5]   ;;  %s2175_s25 = scalar_lea.hbm %s2587_s1, 8192 }
   0x3   :  { %s31_s22 = sshll.u32 %s2269_s21, 4  ;;  %p2176_p0 = scmp.ne.s32.totalorder %s2587_s1, %s2175_s25  ;;  %s32_s22 = int_to_ptr.vmem [resolvable:$true] %s31_s22 }
   0x4   :  { %p2179_p1 = scmp.lt.u32.totalorder %s2175_s25, %s2587_s1 }
   0x6   :  { %p2181_p2 = pnand %p2179_p1, %p2176_p0 }
   0x8   :  { %2184 = shalt.err (!%p2181_p2)
}
   0x9   :  { %s2185_s30 = scalar_lea.vmem %s32_s22, 8192  ;;  %p2190_p4 = scmp.lt.s32.totalorder %s32_s22, %s32_s22 }
   0xa   :  { %p2186_p3 = scmp.ne.s32.totalorder %s32_s22, %s2185_s30  ;;  %p2191_p5 = scmp.lt.s32.totalorder %s2185_s30, %s2185_s30 }
   0xc   :  { %p2192_p6 = por %p2191_p5, %p2190_p4 }
   0xe   :  { %p2193_p7 = pnand %p2192_p6, %p2186_p3 }
  0x10   :  { %2196 = shalt.err (!%p2193_p7)
}
  0x11   :  { %s2270_s7 = smov 512   ;;  %s2271_s8 = smov 32  }
  0x12   :  { %37 = dma.hbm_to_vmem [thread:$0]  %s2587_s1, 8192, %s32_s22, [#allocation6], %s2270_s7, %s2270_s7, %s2271_s8  }
  0x13   :  { %s2272_s11 = smov [#allocation2]   ;;  %s2197_s15 = scalar_lea.hbm %s2586_s0, 256 }
  0x14   :  { %s19_s12 = sshll.u32 %s2272_s11, 4  ;;  %p2198_p8 = scmp.ne.s32.totalorder %s2586_s0, %s2197_s15  ;;  %s20_s12 = int_to_ptr.vmem [resolvable:$true] %s19_s12 }
  0x15   :  { %p2201_p9 = scmp.lt.u32.totalorder %s2197_s15, %s2586_s0 }
  0x17   :  { %p2203_p10 = pnand %p2201_p9, %p2198_p8 }
  0x19   :  { %2206 = shalt.err (!%p2203_p10)
}
  0x1a   :  { %s2207_s20 = scalar_lea.vmem %s20_s12, 256  ;;  %p2212_p12 = scmp.lt.s32.totalorder %s20_s12, %s20_s12 }
  0x1b   :  { %p2208_p11 = scmp.ne.s32.totalorder %s20_s12, %s2207_s20  ;;  %p2213_p13 = scmp.lt.s32.totalorder %s2207_s20, %s2207_s20 }
  0x1d   :  { %p2214_p0 = por %p2213_p13, %p2212_p12 }
  0x1f   :  { %p2215_p1 = pnand %p2214_p0, %p2208_p11 }
  0x21   :  { %2218 = shalt.err (!%p2215_p1)
}
  0x22   :  { %s2273_s1 = smov 128   ;;  %s2274_s21 = smov 8  }
  0x23   :  { %25 = dma.hbm_to_vmem [thread:$0]  %s2586_s0, 256, %s20_s12, [#allocation3], %s2273_s1, %s2273_s1, %s2274_s21  }
  0x24   :  { %s2275_s24 = smov [#allocation7]   ;;  %s2219_s28 = scalar_lea.hbm %s2589_s3, 512 }
  0x25   :  { %s45_s25 = sshll.u32 %s2275_s24, 4  ;;  %p2220_p2 = scmp.ne.s32.totalorder %s2589_s3, %s2219_s28  ;;  %s46_s25 = int_to_ptr.vmem [resolvable:$true] %s45_s25 }
  0x26   :  { %p2223_p3 = scmp.lt.u32.totalorder %s2219_s28, %s2589_s3 }
  0x28   :  { %p2225_p4 = pnand %p2223_p3, %p2220_p2 }
  0x2a   :  { %2228 = shalt.err (!%p2225_p4)
}
  0x2b   :  { %s2229_s9 = scalar_lea.vmem %s46_s25, 512  ;;  %p2234_p6 = scmp.lt.s32.totalorder %s46_s25, %s46_s25 }
  0x2c   :  { %p2230_p5 = scmp.ne.s32.totalorder %s46_s25, %s2229_s9  ;;  %p2235_p7 = scmp.lt.s32.totalorder %s2229_s9, %s2229_s9 }
  0x2e   :  { %p2236_p8 = por %p2235_p7, %p2234_p6 }
  0x30   :  { %p2237_p9 = pnand %p2236_p8, %p2230_p5 }
  0x32   :  { %2240 = shalt.err (!%p2237_p9)
}
  0x33   :  { %51 = dma.hbm_to_vmem [thread:$0]  %s2589_s3, 512, %s46_s25, [#allocation6], %s2273_s1, %s2273_s1, %s2274_s21  }
  0x34   :  { %2263 = dma.done.wait [#allocation3], 256  }
  0x35   :  { %2264 = vsyncadd [#allocation3], 4294967040 }
  0x36   :  { %2265 = dma.done.wait [#allocation6], 8704  }
  0x37   :  { %2266 = vsyncadd [#allocation6], 4294958592  ;;  %v2276_v0 = vmov 0.0   ;;  %v68_v1 = vld [vmem:[#allocation5 + $0x8] sm:$0xff]  ;;  %v67_v3 = vld [vmem:[#allocation5] sm:$0xff]  ;;  %vm2277_vm0 = vmmov 0  }
  0x38   :  { %217 = vmatprep.mubr.f32.mxu0 %v2276_v0  ;;  %294 = vmatprep.mubr.f32.mxu1 %v2276_v0  ;;  %v72_v2 = vld [vmem:[#allocation5 + $0x28] sm:$0xff]  ;;  %v71_v5 = vld [vmem:[#allocation5 + $0x20] sm:$0xff]  ;;  %v70_v28 = vld [vmem:[#allocation5 + $0x18] sm:$0xff]  ;;  %vm320_vm1 = vcmask 64512   ;;  %s2278_s12 = smov 112   ;;  %s2279_s13 = smov 120  }
  0x39   :  { %v2047_v4 = vpack.c.bf16 %v72_v2, %v68_v1  ;;  %v76_v6 = vld [vmem:[#allocation5 + $0x48] sm:$0xff]  ;;  %v2049_v8 = vpack.c.bf16 %v71_v5, %v67_v3  ;;  %v75_v10 = vld [vmem:[#allocation5 + $0x40] sm:$0xff]  ;;  %v74_v29 = vld [vmem:[#allocation5 + $0x38] sm:$0xff]  ;;  %s2282_s14 = smov 16   ;;  %s2283_s15 = smov 24   ;;  %vm990_vm2 = vcmask 130048  }
  0x3a   :  { %v80_v7 = vld [vmem:[#allocation5 + $0x68] sm:$0xff]  ;;  %v79_v11 = vld [vmem:[#allocation5 + $0x60] sm:$0xff]  ;;  %v69_v30 = vld [vmem:[#allocation5 + $0x10] sm:$0xff]  ;;  %v2079_v32 = vpack.c.bf16 %v74_v29, %v70_v28  ;;  %vm992_vm3 = vcmask 195584   ;;  %vm994_vm4 = vcmask 261120  }
  0x3b   :  { %v2051_v9 = vpack.c.bf16 %v80_v7, %v76_v6  ;;  %v84_v12 = vld [vmem:[#allocation5 + $0x88] sm:$0xff]  ;;  %2048 = vmatprep.subr.bf16.mxu0 %v2047_v4  ;;  %v2053_v14 = vpack.c.bf16 %v79_v11, %v75_v10  ;;  %v83_v16 = vld [vmem:[#allocation5 + $0x80] sm:$0xff]  ;;  %v73_v33 = vld [vmem:[#allocation5 + $0x30] sm:$0xff] }
  0x3c   :  { %v88_v13 = vld [vmem:[#allocation5 + $0xa8] sm:$0xff]  ;;  %2050 = vmatpush1.bf16.msra.mxu0 %v2049_v8  ;;  %v87_v17 = vld [vmem:[#allocation5 + $0xa0] sm:$0xff]  ;;  %v78_v34 = vld [vmem:[#allocation5 + $0x58] sm:$0xff]  ;;  %v2081_v37 = vpack.c.bf16 %v73_v33, %v69_v30  ;;  %2080 = vmatprep.subr.bf16.mxu1 %v2079_v32 }
  0x3d   :  { %2052 = vmatprep.subr.bf16.mxu0 %v2051_v9  ;;  %v2055_v15 = vpack.c.bf16 %v88_v13, %v84_v12  ;;  %v92_v18 = vld [vmem:[#allocation5 + $0xc8] sm:$0xff]  ;;  %v2057_v20 = vpack.c.bf16 %v87_v17, %v83_v16  ;;  %v91_v22 = vld [vmem:[#allocation5 + $0xc0] sm:$0xff]  ;;  %v82_v35 = vld [vmem:[#allocation5 + $0x78] sm:$0xff] }
  0x3e   :  { %v96_v19 = vld [vmem:[#allocation5 + $0xe8] sm:$0xff]  ;;  %v95_v23 = vld [vmem:[#allocation5 + $0xe0] sm:$0xff]  ;;  %v2083_v38 = vpack.c.bf16 %v82_v35, %v78_v34  ;;  %v77_v39 = vld [vmem:[#allocation5 + $0x50] sm:$0xff]  ;;  %2082 = vmatpush1.bf16.msra.mxu1 %v2081_v37 }
  0x3f   :  { %v2059_v21 = vpack.c.bf16 %v96_v19, %v92_v18  ;;  %v100_v24 = vld [vmem:[#allocation5 + $0x108] sm:$0xff]  ;;  %v99_v26 = vld [vmem:[#allocation5 + $0x100] sm:$0xff]  ;;  %v2061_v31 = vpack.c.bf16 %v95_v23, %v91_v22  ;;  %v81_v40 = vld [vmem:[#allocation5 + $0x70] sm:$0xff] }
  0x40   :  { %2054 = vmatpush1.bf16.msra.mxu0 %v2053_v14  ;;  %v104_v25 = vld [vmem:[#allocation5 + $0x128] sm:$0xff]  ;;  %v103_v27 = vld [vmem:[#allocation5 + $0x120] sm:$0xff]  ;;  %v86_v41 = vld [vmem:[#allocation5 + $0x98] sm:$0xff]  ;;  %v2085_v45 = vpack.c.bf16 %v81_v40, %v77_v39  ;;  %2084 = vmatprep.subr.bf16.mxu1 %v2083_v38 }
  0x41   :  { %2056 = vmatprep.subr.bf16.mxu0 %v2055_v15  ;;  %v2063_v36 = vpack.c.bf16 %v104_v25, %v100_v24  ;;  %v108_v42 = vld [vmem:[#allocation5 + $0x148] sm:$0xff]  ;;  %v90_v44 = vld [vmem:[#allocation5 + $0xb8] sm:$0xff]  ;;  %v2065_v46 = vpack.c.bf16 %v103_v27, %v99_v26  ;;  %v107_v47 = vld [vmem:[#allocation5 + $0x140] sm:$0xff] }
  0x42   :  { %v112_v43 = vld [vmem:[#allocation5 + $0x168] sm:$0xff]  ;;  %v2087_v48 = vpack.c.bf16 %v90_v44, %v86_v41  ;;  %v85_v49 = vld [vmem:[#allocation5 + $0x90] sm:$0xff]  ;;  %v111_v52 = vld [vmem:[#allocation5 + $0x160] sm:$0xff]  ;;  %2086 = vmatpush1.bf16.msra.mxu1 %v2085_v45 }
  0x43   :  { %v89_v50 = vld [vmem:[#allocation5 + $0xb0] sm:$0xff]  ;;  %v2067_v51 = vpack.c.bf16 %v112_v43, %v108_v42  ;;  %v94_v53 = vld [vmem:[#allocation5 + $0xd8] sm:$0xff]  ;;  %v116_v55 = vld [vmem:[#allocation5 + $0x188] sm:$0xff]  ;;  %v2069_v58 = vpack.c.bf16 %v111_v52, %v107_v47 }
  0x44   :  { %2058 = vmatpush1.bf16.msra.mxu0 %v2057_v20  ;;  %v98_v54 = vld [vmem:[#allocation5 + $0xf8] sm:$0xff]  ;;  %v120_v56 = vld [vmem:[#allocation5 + $0x1a8] sm:$0xff]  ;;  %v2089_v57 = vpack.c.bf16 %v89_v50, %v85_v49  ;;  %v115_v59 = vld [vmem:[#allocation5 + $0x180] sm:$0xff]  ;;  %2088 = vmatprep.subr.bf16.mxu1 %v2087_v48 }
  0x45   :  { %2060 = vmatprep.subr.bf16.mxu0 %v2059_v21  ;;  %v2091_v60 = vpack.c.bf16 %v98_v54, %v94_v53  ;;  %v93_v61 = vld [vmem:[#allocation5 + $0xd0] sm:$0xff]  ;;  %v2071_v63 = vpack.c.bf16 %v120_v56, %v116_v55  ;;  %v119_v1 = vld [vmem:[#allocation5 + $0x1a0] sm:$0xff]  ;;  %v102_v2 = vld [vmem:[#allocation5 + $0x118] sm:$0xff] }
  0x46   :  { %v97_v62 = vld [vmem:[#allocation5 + $0xf0] sm:$0xff]  ;;  %v106_v3 = vld [vmem:[#allocation5 + $0x138] sm:$0xff]  ;;  %v124_v4 = vld [vmem:[#allocation5 + $0x1c8] sm:$0xff]  ;;  %2090 = vmatpush1.bf16.msra.mxu1 %v2089_v57  ;;  %v2073_v7 = vpack.c.bf16 %v119_v1, %v115_v59 }
  0x47   :  { %v128_v5 = vld [vmem:[#allocation5 + $0x1e8] sm:$0xff]  ;;  %v2093_v6 = vpack.c.bf16 %v97_v62, %v93_v61  ;;  %v123_v8 = vld [vmem:[#allocation5 + $0x1c0] sm:$0xff]  ;;  %2092 = vmatprep.subr.bf16.mxu1 %v2091_v60  ;;  %v2095_v9 = vpack.c.bf16 %v106_v3, %v102_v2  ;;  %v101_v10 = vld [vmem:[#allocation5 + $0x110] sm:$0xff] }
  0x48   :  { %2062 = vmatpush1.bf16.msra.mxu0 %v2061_v31  ;;  %v105_v11 = vld [vmem:[#allocation5 + $0x130] sm:$0xff]  ;;  %v2075_v12 = vpack.c.bf16 %v128_v5, %v124_v4  ;;  %v127_v13 = vld [vmem:[#allocation5 + $0x1e0] sm:$0xff]  ;;  %v110_v14 = vld [vmem:[#allocation5 + $0x158] sm:$0xff] }
  0x49   :  { %2064 = vmatprep.subr.bf16.mxu0 %v2063_v36  ;;  %v114_v15 = vld [vmem:[#allocation5 + $0x178] sm:$0xff]  ;;  %v2097_v16 = vpack.c.bf16 %v105_v11, %v101_v10  ;;  %v2077_v17 = vpack.c.bf16 %v127_v13, %v123_v8  ;;  %v109_v19 = vld [vmem:[#allocation5 + $0x150] sm:$0xff]  ;;  %v133_v36 = vlaneseq }
  0x4a   :  { %2094 = vmatpush1.bf16.msra.mxu1 %v2093_v6  ;;  %v2099_v18 = vpack.c.bf16 %v114_v15, %v110_v14  ;;  %v113_v20 = vld [vmem:[#allocation5 + $0x170] sm:$0xff]  ;;  %v118_v21 = vld [vmem:[#allocation5 + $0x198] sm:$0xff] }
  0x4b   :  { %2096 = vmatprep.subr.bf16.mxu1 %v2095_v9  ;;  %v122_v22 = vld [vmem:[#allocation5 + $0x1b8] sm:$0xff]  ;;  %v2101_v23 = vpack.c.bf16 %v113_v20, %v109_v19  ;;  %v2364_v24 = vld [vmem:[#allocation2] sm:$0xff]  ;;  %v2381_v37 = vshrl.u32 %v133_v36, 7 }
  0x4c   :  { %2066 = vmatpush1.bf16.msra.mxu0 %v2065_v46  ;;  %v2103_v25 = vpack.c.bf16 %v122_v22, %v118_v21  ;;  %v117_v26 = vld [vmem:[#allocation5 + $0x190] sm:$0xff]  ;;  %v126_v28 = vld [vmem:[#allocation5 + $0x1d8] sm:$0xff] }
  0x4d   :  { %2068 = vmatprep.subr.bf16.mxu0 %v2067_v51  ;;  %v121_v27 = vld [vmem:[#allocation5 + $0x1b0] sm:$0xff]  ;;  %v130_v29 = vld [vmem:[#allocation5 + $0x1f8] sm:$0xff]  ;;  %v139_v38 = vsub.s32 1, %v2381_v37  ;;  %v135_v40 = vsub.s32 0, %v2381_v37  ;;  %v143_v46 = vsub.s32 2, %v2381_v37 }
  0x4e   :  { %2098 = vmatpush1.bf16.msra.mxu1 %v2097_v16  ;;  %v2105_v30 = vpack.c.bf16 %v121_v27, %v117_v26  ;;  %v2107_v31 = vpack.c.bf16 %v130_v29, %v126_v28  ;;  %v125_v32 = vld [vmem:[#allocation5 + $0x1d0] sm:$0xff]  ;;  %v2372_v35 = vld [vmem:[#allocation2 + $0x8] sm:$0xff] }
  0x4f   :  { %2100 = vmatprep.subr.bf16.mxu1 %v2099_v18  ;;  %v129_v33 = vld [vmem:[#allocation5 + $0x1f0] sm:$0xff] }
  0x50   :  { %2070 = vmatpush1.bf16.msra.mxu0 %v2069_v58  ;;  %v2109_v34 = vpack.c.bf16 %v129_v33, %v125_v32  ;;  %v2387_v39 = vld [vmem:[%s2588_s2] sm:$0xf]  ;;  %s2280_s2 = smov 104  }
  0x51   :  { %2072 = vmatprep.subr.bf16.mxu0 %v2071_v63  ;;  %v2391_v41 = vrot.slane %v2387_v39, %v139_v38  ;;  %v2394_v44 = vrot.slane %v2387_v39, %v135_v40  ;;  %v2406_v48 = vrot.slane %v2387_v39, %v143_v46 }
  0x52   :  { %2102 = vmatpush1.bf16.msra.mxu1 %v2101_v23 }
  0x53   :  { %2104 = vmatprep.subr.bf16.mxu1 %v2103_v25 }
  0x54   :  { %2074 = vmatpush1.bf16.msra.mxu0 %v2073_v7 }
  0x55   :  { %2076 = vmatprep.subr.bf16.mxu0 %v2075_v12 }
  0x56   :  { %2106 = vmatpush1.bf16.msra.mxu1 %v2105_v30 }
  0x57   :  { %2108 = vmatprep.subr.bf16.mxu1 %v2107_v31 }
  0x58   :  { %2078 = vmatpush1.bf16.msra.mxu0 %v2077_v17 }
  0x59   :  { %1955 = vmatprep.subr.mxu0 %v2276_v0 }
  0x5a   :  { %2110 = vmatpush1.bf16.msra.mxu1 %v2109_v34 }
  0x5b   :  { %218 = vmatmul.mubr.f32.vlgmr.msra.gmra.mrb[0].mxu0 %v2364_v24  ;;  %1945 = vmatprep.subr.mxu1 %v2276_v0 }
  0x5c   :  { %223 = vmatprep.mubr.f32.mxu0 %v2276_v0 }
  0x5d   :  { %295 = vmatmul.mubr.f32.vlgmr.msra.gmra.mrb[0].mxu1 %v2364_v24 }
  0x5e   :  { %300 = vmatprep.mubr.f32.mxu1 %v2276_v0 }
  0x5f   :  { %224 = vmatmul.mubr.f32.gmra.mrb[2].mxu0 %v2372_v35 }
  0x60   :  { %1957 = vmatprep.mubr.msk.f32.mxu0 %vm2277_vm0, %v2276_v0 }
  0x61   :  { %301 = vmatmul.mubr.f32.gmra.mrb[2].mxu1 %v2372_v35 }
  0x62   :  { %1947 = vmatprep.mubr.msk.f32.mxu1 %vm2277_vm0, %v2276_v0 }
 0x12e   :  { %v219_v42 = vpop.f32.mrb[0].mxu0 }
 0x12f   :  { %v221_v43 = vpop.f32.mrb[1].mxu0  ;;  %v220_v47 = vadd.f32 %v219_v42, %v2394_v44 }
 0x130   :  { %v222_v45 = vadd.f32 %v221_v43, %v2391_v41  ;;  %v296_v49 = vpop.f32.mrb[0].mxu1 }
 0x131   :  { %v2413_v50 = vadd.f32 %v296_v49, %v2406_v48  ;;  %v2415_v51 = vpop.f32.mrb[1].mxu1 }
 0x132   :  { %649 = vrot.lane.b32.xlu1 %v222_v45, %s2278_s12  ;;  %483 = vrot.lane.b32.xlu0 %v222_v45, %s2279_s13  ;;  %v2424_v54 = vpop.f32.mrb[2].mxu0 }
 0x133   :  { %1946 = vmatpush3.xpose.msk.msra.mxu1 %vm320_vm1, %v222_v45  ;;  %v2426_v55 = vpop.f32.mrb[3].mxu0 }
 0x134   :  { %1950 = vmatprep.subr.mxu1 %v2276_v0  ;;  %v2420_v52 = vpop.f32.mrb[2].mxu1 }
 0x135   :  { %v2422_v53 = vpop.f32.mrb[3].mxu1 }
 0x136   :  { %1948 = vmatmul.mubr.msk.f32.vlgmr.msra.gmra.mrb[4].mxu1 %vm320_vm1, %v220_v47  ;;  %647 = vrot.lane.b32.xlu1 %v220_v47, %s2278_s12 }
 0x137   :  { %481 = vrot.lane.b32.xlu0 %v220_v47, %s2279_s13  ;;  %1952 = vmatprep.mubr.msk.f32.mxu1 %vm2277_vm0, %v2276_v0 }
 0x138   :  { %1951 = vmatpush3.msra.mxu1 %v2413_v50 }
 0x139   :  { %1960 = vmatprep.subr.mxu1 %v2276_v0 }
 0x13a   :  { %812 = vrot.lane.b32.xlu1 %v220_v47, %s2280_s2 }
 0x13b   :  { %814 = vrot.lane.b32.xlu0 %v222_v45, %s2280_s2 }
 0x1a4   :  { %v484_v56 = vpop.permute.xlu0 %483  ;;  %v650_v57 = vpop.permute.xlu1 %649 }
 0x1a5   :  { %1956 = vmatpush3.xpose.msk.msra.mxu0 %vm320_vm1, %v484_v56 }
 0x1a6   :  { %1965 = vmatprep.subr.mxu0 %v2276_v0 }
 0x1a8   :  { %v648_v59 = vpop.permute.xlu1 %647 }
 0x1a9   :  { %v482_v58 = vpop.permute.xlu0 %481 }
 0x1aa   :  { %1958 = vmatmul.mubr.msk.f32.vlgmr.msra.gmra.mrb[4].mxu0 %vm320_vm1, %v482_v58 }
 0x1ab   :  { %1966 = vmatpush3.xpose.msk.msra.mxu0 %vm320_vm1, %v650_v57  ;;  %1967 = vmatprep.mubr.msk.f32.mxu0 %vm2277_vm0, %v2276_v0 }
 0x1ac   :  { %1975 = vmatprep.subr.mxu0 %v2276_v0  ;;  %v813_v61 = vpop.permute.xlu1 %812 }
 0x1ad   :  { %v815_v60 = vpop.permute.xlu0 %814 }
 0x1ae   :  { %1968 = vmatmul.mubr.msk.f32.vlgmr.msra.gmra.mrb[6].mxu0 %vm320_vm1, %v648_v59  ;;  %v228_v59 = vadd.f32 %v2426_v55, %v2391_v41 }
 0x1af   :  { %1976 = vmatpush3.xpose.msk.msra.mxu0 %vm320_vm1, %v815_v60  ;;  %1977 = vmatprep.mubr.msk.f32.mxu0 %vm2277_vm0, %v2276_v0  ;;  %v226_v60 = vadd.f32 %v2424_v54, %v2394_v44  ;;  %v2281_v44 = vmov 0.0|0.0  }
 0x1b0   :  { %2111 = vmatprep.subr.bf16.mxu0 %v2281_v44 }
 0x1b2   :  { %1978 = vmatmul.mubr.msk.f32.vlgmr.msra.gmra.mrb[8].mxu0 %vm320_vm1, %v813_v61  ;;  %v2479_v61 = vadd.f32 %v2420_v52, %v2406_v48  ;;  %v311_v48 = vld [vmem:[#allocation7 + $0x10] sm:$0xff]  ;;  %v312_v52 = vld [vmem:[#allocation7 + $0x18] sm:$0xff] }
 0x1b3   :  { %1993 = vmatprep.mubr.msk.f32.mxu0 %vm2277_vm0, %v2276_v0 }
 0x209   :  { %v393_v62 = vpop.f32.mrb[4].mxu1 }
 0x20a   :  { %v1949_v63 = vpop.f32.mrb[5].mxu1  ;;  %v397_v1 = vsel %vm320_vm1, %v393_v62, -inf }
 0x20b   :  { %398 = vmax.xlane.f32.xlu0 %v397_v1  ;;  %v310_v63 = vld [vmem:[#allocation7 + $0x8] sm:$0xff]  ;;  %v2115_v1 = vpack.c.bf16 %v312_v52, %v311_v48 }
 0x27d   :  { %v555_v2 = vpop.f32.mrb[4].mxu0 }
 0x27e   :  { %v1959_v3 = vpop.f32.mrb[5].mxu0  ;;  %v559_v4 = vsel %vm320_vm1, %v555_v2, -inf }
 0x27f   :  { %560 = vmax.xlane.f32.xlu1 %v559_v4 }
 0x281   :  { %v721_v5 = vpop.f32.mrb[6].mxu0 }
 0x282   :  { %v1969_v6 = vpop.f32.mrb[7].mxu0  ;;  %v725_v7 = vsel %vm320_vm1, %v721_v5, -inf }
 0x283   :  { %726 = vmax.xlane.f32.xlu0 %v725_v7 }
 0x285   :  { %v886_v8 = vpop.f32.mrb[8].mxu0 }
 0x286   :  { %v1979_v9 = vpop.f32.mrb[9].mxu0  ;;  %v890_v10 = vsel %vm320_vm1, %v886_v8, -inf }
 0x287   :  { %891 = vmax.xlane.f32.xlu0 %v890_v10 }
 0x290   :  { %571 = vrot.lane.b32.xlu1 %v2413_v50, %s2279_s13 }
 0x298   :  { %v399_v11 = vpop.xlane.xlu0 %398 }
 0x299   :  { %v400_v12 = vsub.f32 %v393_v62, %v399_v11  ;;  %v309_v62 = vld [vmem:[#allocation7] sm:$0xff] }
 0x29a   :  { %v2112_v54 = vpack.c.bf16 %v310_v63, %v309_v62 }
 0x29b   :  { %v401_v13 = vmul.f32 1.442695, %v400_v12 }
 0x29c   :  { %2113 = vmatpush3.bf16.msra.mxu0 %v2112_v54 }
 0x29d   :  { %2139 = vpow2.f32 %v401_v13  ;;  %2114 = vmatprep.subr.bf16.mxu0 %v2281_v44 }
 0x2a0   :  { %2116 = vmatpush3.bf16.msra.mxu0 %v2115_v1 }
 0x2a1   :  { %2006 = vmatprep.subr.mxu0 %v2276_v0 }
 0x2a7   :  { %v2140_v14 = vpop.eup %2139 }
 0x2a8   :  { %v403_v15 = vsel %vm320_vm1, %v2140_v14, 0.0 }
 0x2b4   :  { %404 = vadd.xlane.f32.xlu1 %v403_v15 }
 0x30c   :  { %v561_v16 = vpop.xlane.xlu1 %560 }
 0x30d   :  { %v562_v17 = vsub.f32 %v555_v2, %v561_v16 }
 0x30f   :  { %v563_v18 = vmul.f32 1.442695, %v562_v17 }
 0x310   :  { %v727_v19 = vpop.xlane.xlu0 %726  ;;  %v572_v32 = vpop.permute.xlu1 %571 }
 0x311   :  { %2141 = vpow2.f32 %v563_v18  ;;  %v728_v20 = vsub.f32 %v721_v5, %v727_v19 }
 0x313   :  { %v729_v21 = vmul.f32 1.442695, %v728_v20 }
 0x314   :  { %v892_v22 = vpop.xlane.xlu0 %891 }
 0x315   :  { %2143 = vpow2.f32 %v729_v21  ;;  %v893_v23 = vsub.f32 %v886_v8, %v892_v22 }
 0x317   :  { %v894_v25 = vmul.f32 1.442695, %v893_v23 }
 0x319   :  { %2145 = vpow2.f32 %v894_v25  ;;  %v147_v25 = vsub.s32 3, %v2381_v37 }
 0x31b   :  { %v2142_v26 = vpop.eup %2141 }
 0x31c   :  { %v565_v27 = vsel %vm320_vm1, %v2142_v26, 0.0 }
 0x31d   :  { %566 = vadd.xlane.f32.xlu0 %v565_v27  ;;  %v2519_v27 = vrot.slane %v2387_v39, %v147_v25 }
 0x31f   :  { %v2144_v28 = vpop.eup %2143 }
 0x320   :  { %v731_v29 = vsel %vm320_vm1, %v2144_v28, 0.0 }
 0x321   :  { %732 = vadd.xlane.f32.xlu1 %v731_v29  ;;  %v299_v29 = vadd.f32 %v2415_v51, %v2519_v27 }
 0x323   :  { %v2146_v30 = vpop.eup %2145 }
 0x324   :  { %v896_v31 = vsel %vm320_vm1, %v2146_v30, 0.0 }
 0x325   :  { %897 = vadd.xlane.f32.xlu0 %v896_v31 }
 0x332   :  { %901 = vrot.lane.b32.xlu1 %v2413_v50, %s2280_s2 }
 0x33b   :  { %736 = vrot.lane.b32.xlu0 %v2413_v50, %s2278_s12 }
 0x341   :  { %v405_v33 = vpop.xlane.xlu1 %404 }
 0x342   :  { %2147 = vrcp.f32 %v405_v33 }
 0x34c   :  { %v2148_v34 = vpop.eup %2147 }
 0x34d   :  { %v407_v38 = vmul.f32 %v2148_v34, %v2140_v14 }
 0x34f   :  { %1953 = vmatmul.mubr.msk.f32.vlgmr.msra.gmra.mrb[6].mxu1 %vm320_vm1, %v407_v38 }
 0x350   :  { %1961 = vmatpush3.msra.mxu1 %v572_v32  ;;  %1962 = vmatprep.mubr.msk.f32.mxu1 %vm2277_vm0, %v2276_v0 }
 0x351   :  { %1970 = vmatprep.subr.mxu1 %v2276_v0 }
 0x3aa   :  { %v567_v40 = vpop.xlane.xlu0 %566 }
 0x3ab   :  { %2149 = vrcp.f32 %v567_v40 }
 0x3ae   :  { %v733_v42 = vpop.xlane.xlu1 %732 }
 0x3af   :  { %2151 = vrcp.f32 %v733_v42 }
 0x3b2   :  { %v898_v43 = vpop.xlane.xlu0 %897  ;;  %v902_v56 = vpop.permute.xlu1 %901 }
 0x3b3   :  { %2153 = vrcp.f32 %v898_v43 }
 0x3b5   :  { %v2150_v45 = vpop.eup %2149 }
 0x3b6   :  { %v569_v46 = vmul.f32 %v2150_v45, %v2142_v26  ;;  %v737_v47 = vpop.permute.xlu0 %736 }
 0x3b8   :  { %1963 = vmatmul.mubr.msk.f32.vlgmr.msra.gmra.mrb[8].mxu1 %vm320_vm1, %v569_v46 }
 0x3b9   :  { %v2152_v49 = vpop.eup %2151  ;;  %1971 = vmatpush3.msra.mxu1 %v737_v47  ;;  %1972 = vmatprep.mubr.msk.f32.mxu1 %vm2277_vm0, %v2276_v0 }
 0x3ba   :  { %v735_v50 = vmul.f32 %v2152_v49, %v2144_v28  ;;  %1980 = vmatprep.subr.mxu1 %v2276_v0 }
 0x3bc   :  { %1973 = vmatmul.mubr.msk.f32.vlgmr.msra.gmra.mrb[10].mxu1 %vm320_vm1, %v735_v50 }
 0x3bd   :  { %v2154_v57 = vpop.eup %2153  ;;  %1981 = vmatpush3.msra.mxu1 %v902_v56  ;;  %1982 = vmatprep.mubr.msk.f32.mxu1 %vm2277_vm0, %v2276_v0 }
 0x3be   :  { %v900_v58 = vmul.f32 %v2154_v57, %v2146_v30  ;;  %1996 = vmatprep.subr.mxu1 %v2276_v0  ;;  %v307_v30 = vadd.f32 %v299_v29, %v2364_v24 }
 0x3c0   :  { %1983 = vmatmul.mubr.msk.f32.vlgmr.msra.gmra.mrb[12].mxu1 %vm320_vm1, %v900_v58 }
 0x3c1   :  { %1998 = vmatprep.mubr.msk.f32.mxu1 %vm2277_vm0, %v2276_v0 }
 0x3c4   :  { %1997 = vmatpush3.xpose.msk.msra.mxu1 %vm320_vm1, %v228_v59 }
 0x3c5   :  { %2001 = vmatprep.subr.mxu1 %v2276_v0 }
 0x3c7   :  { %1999 = vmatmul.mubr.msk.f32.vlgmr.msra.gmra.mrb[14].mxu1 %vm320_vm1, %v226_v60 }
 0x3c8   :  { %2002 = vmatpush3.msra.mxu1 %v2479_v61  ;;  %2003 = vmatprep.mubr.msk.f32.mxu1 %vm2277_vm0, %v2276_v0 }
 0x3c9   :  { %2011 = vmatprep.subr.mxu1 %v2276_v0 }
 0x422   :  { %v477_v41 = vpop.f32.mrb[6].mxu1 }
 0x423   :  { %v1954_v55 = vpop.f32.mrb[7].mxu1 }
 0x48b   :  { %v643_v2 = vpop.f32.mrb[8].mxu1 }
 0x48c   :  { %978 = vrot.lane.b32.xlu1 %v643_v2, %s2274_s21  ;;  %v1964_v3 = vpop.f32.mrb[9].mxu1 }
 0x48f   :  { %v808_v4 = vpop.f32.mrb[10].mxu1 }
 0x490   :  { %982 = vrot.lane.b32.xlu0 %v808_v4, %s2282_s14  ;;  %v1974_v5 = vpop.f32.mrb[11].mxu1 }
 0x493   :  { %v973_v6 = vpop.f32.mrb[12].mxu1 }
 0x494   :  { %1258 = vrot.lane.b32.xlu0 %v228_v59, %s2279_s13  ;;  %986 = vrot.lane.b32.xlu1 %v973_v6, %s2283_s15  ;;  %v1984_v7 = vpop.f32.mrb[13].mxu1 }
 0x498   :  { %1424 = vrot.lane.b32.xlu0 %v228_v59, %s2278_s12  ;;  %1256 = vrot.lane.b32.xlu1 %v226_v60, %s2279_s13 }
 0x49a   :  { %v1168_v8 = vpop.f32.mrb[14].mxu1 }
 0x49b   :  { %v2000_v9 = vpop.f32.mrb[15].mxu1  ;;  %v1172_v10 = vsel %vm320_vm1, %v1168_v8, -inf }
 0x49c   :  { %1589 = vrot.lane.b32.xlu0 %v228_v59, %s2280_s2  ;;  %1422 = vrot.lane.b32.xlu1 %v226_v60, %s2278_s12 }
 0x4a0   :  { %1587 = vrot.lane.b32.xlu1 %v226_v60, %s2280_s2 }
 0x4bb   :  { %1173 = vmax.xlane.f32.xlu0 %v1172_v10 }
 0x4fe   :  { %v979_v11 = vpop.permute.xlu1 %978 }
 0x4ff   :  { %v989_v13 = vsel %vm320_vm1, %v477_v41, %v979_v11 }
 0x502   :  { %v983_v12 = vpop.permute.xlu0 %982 }
 0x503   :  { %v991_v14 = vsel %vm990_vm2, %v989_v13, %v983_v12 }
 0x506   :  { %v1259_v15 = vpop.permute.xlu0 %1258  ;;  %v987_v16 = vpop.permute.xlu1 %986 }
 0x507   :  { %v993_v17 = vsel %vm992_vm3, %v991_v14, %v987_v16 }
 0x508   :  { %1994 = vmatmul.mubr.msk.f32.vlgmr.msra.gmra.mrb[10].mxu0 %vm994_vm4, %v993_v17 }
 0x509   :  { %2007 = vmatpush3.xpose.msk.msra.mxu0 %vm320_vm1, %v1259_v15  ;;  %2008 = vmatprep.mubr.msk.f32.mxu0 %vm2277_vm0, %v2276_v0 }
 0x50a   :  { %v1425_v18 = vpop.permute.xlu0 %1424  ;;  %v1257_v19 = vpop.permute.xlu1 %1256  ;;  %2016 = vmatprep.subr.mxu0 %v2276_v0 }
 0x50c   :  { %2009 = vmatmul.mubr.msk.f32.vlgmr.msra.gmra.mrb[12].mxu0 %vm320_vm1, %v1257_v19 }
 0x50d   :  { %2017 = vmatpush3.xpose.msk.msra.mxu0 %vm320_vm1, %v1425_v18  ;;  %2018 = vmatprep.mubr.msk.f32.mxu0 %vm2277_vm0, %v2276_v0 }
 0x50e   :  { %v1590_v20 = vpop.permute.xlu0 %1589  ;;  %v1423_v21 = vpop.permute.xlu1 %1422  ;;  %2026 = vmatprep.subr.mxu0 %v2276_v0 }
 0x510   :  { %2019 = vmatmul.mubr.msk.f32.vlgmr.msra.gmra.mrb[14].mxu0 %vm320_vm1, %v1423_v21 }
 0x511   :  { %2027 = vmatpush3.xpose.msk.msra.mxu0 %vm320_vm1, %v1590_v20  ;;  %2028 = vmatprep.mubr.msk.f32.mxu0 %vm2277_vm0, %v2276_v0 }
 0x512   :  { %v1588_v22 = vpop.permute.xlu1 %1587  ;;  %2117 = vmatprep.subr.bf16.mxu0 %v2281_v44 }
 0x514   :  { %2029 = vmatmul.mubr.msk.f32.vlgmr.msra.gmra.mrb[16].mxu0 %vm320_vm1, %v1588_v22 }
 0x515   :  { %2119 = vmatpush3.bf16.msra.mxu0 %v2112_v54  ;;  %2044 = vmatprep.mubr.msk.f32.mxu0 %vm2277_vm0, %v2276_v0 }
 0x516   :  { %2120 = vmatprep.subr.bf16.mxu0 %v2281_v44 }
 0x519   :  { %2122 = vmatpush3.bf16.msra.mxu0 %v2115_v1 }
 0x548   :  { %v1174_v23 = vpop.xlane.xlu0 %1173 }
 0x549   :  { %v1175_v26 = vsub.f32 %v1168_v8, %v1174_v23 }
 0x54b   :  { %v1176_v28 = vmul.f32 1.442695, %v1175_v26 }
 0x54d   :  { %2155 = vpow2.f32 %v1176_v28 }
 0x557   :  { %v2156_v37 = vpop.eup %2155 }
 0x558   :  { %v1178_v45 = vsel %vm320_vm1, %v2156_v37, 0.0 }
 0x5db   :  { %v1064_v31 = vpop.f32.mrb[10].mxu0 }
 0x5dc   :  { %v2524_v32 = vadd.f32 %v1064_v31, %v307_v30  ;;  %v1995_v33 = vpop.f32.mrb[11].mxu0  ;;  %v316_v30 = vand.u32 127, %v133_v36 }
 0x5de   :  { %vm317_vm5 = vcmp.lt.s32.totalorder %v316_v30, 32 }
 0x5df   :  { %v1330_v34 = vpop.f32.mrb[12].mxu0 }
 0x5e0   :  { %v2010_v38 = vpop.f32.mrb[13].mxu0  ;;  %v1334_v40 = vsel %vm320_vm1, %v1330_v34, -inf }
 0x5e1   :  { %1335 = vmax.xlane.f32.xlu1 %v1334_v40 }
 0x5e3   :  { %v1496_v42 = vpop.f32.mrb[14].mxu0 }
 0x5e4   :  { %v2020_v39 = vpop.f32.mrb[15].mxu0  ;;  %v1500_v43 = vsel %vm320_vm1, %v1496_v42, -inf }
 0x5e5   :  { %1501 = vmax.xlane.f32.xlu0 %v1500_v43  ;;  %1179 = vadd.xlane.f32.xlu1 %v1178_v45  ;;  %v305_v45 = vadd.f32 %v2422_v53, %v2519_v27 }
 0x5e7   :  { %v1661_v51 = vpop.f32.mrb[16].mxu0 }
 0x5e8   :  { %v2030_v24 = vpop.f32.mrb[17].mxu0  ;;  %v1665_v46 = vsel %vm320_vm1, %v1661_v51, -inf }
 0x5e9   :  { %1666 = vmax.xlane.f32.xlu0 %v1665_v46 }
 0x5f6   :  { %1346 = vrot.lane.b32.xlu1 %v2479_v61, %s2279_s13 }
 0x66e   :  { %v1336_v47 = vpop.xlane.xlu1 %1335 }
 0x66f   :  { %v1337_v49 = vsub.f32 %v1330_v34, %v1336_v47  ;;  %v1874_v34 = vsel %vm317_vm5, 1.0, %v2276_v0 }
 0x671   :  { %v1338_v50 = vmul.f32 1.442695, %v1337_v49  ;;  %v1889_v49 = vld [vmem:[%s2591_s5] ss:$0 sm:$0xff] }
 0x672   :  { %v1180_v56 = vpop.xlane.xlu1 %1179  ;;  %v1502_v57 = vpop.xlane.xlu0 %1501 }
 0x673   :  { %2157 = vpow2.f32 %v1338_v50  ;;  %v1503_v58 = vsub.f32 %v1496_v42, %v1502_v57 }
 0x674   :  { %2159 = vrcp.f32 %v1180_v56 }
 0x675   :  { %v1504_v59 = vmul.f32 1.442695, %v1503_v58 }
 0x676   :  { %v1667_v60 = vpop.xlane.xlu0 %1666  ;;  %v1347_v52 = vpop.permute.xlu1 %1346 }
 0x677   :  { %2161 = vpow2.f32 %v1504_v59  ;;  %v1668_v41 = vsub.f32 %v1661_v51, %v1667_v60  ;;  %v308_v51 = vadd.f32 %v305_v45, %v2372_v35 }
 0x679   :  { %v1669_v55 = vmul.f32 1.442695, %v1668_v41 }
 0x67b   :  { %2163 = vpow2.f32 %v1669_v55 }
 0x67d   :  { %v2158_v62 = vpop.eup %2157 }
 0x67e   :  { %v2160_v63 = vpop.eup %2159  ;;  %v1340_v44 = vsel %vm320_vm1, %v2158_v62, 0.0 }
 0x67f   :  { %v1182_v54 = vmul.f32 %v2160_v63, %v2156_v37  ;;  %1341 = vadd.xlane.f32.xlu0 %v1340_v44 }
 0x681   :  { %v2162_v48 = vpop.eup %2161  ;;  %2004 = vmatmul.mubr.msk.f32.vlgmr.msra.gmra.mrb[16].mxu1 %vm320_vm1, %v1182_v54 }
 0x682   :  { %2012 = vmatpush3.msra.mxu1 %v1347_v52  ;;  %v1506_v1 = vsel %vm320_vm1, %v2162_v48, 0.0  ;;  %2013 = vmatprep.mubr.msk.f32.mxu1 %vm2277_vm0, %v2276_v0 }
 0x683   :  { %1507 = vadd.xlane.f32.xlu1 %v1506_v1  ;;  %2021 = vmatprep.subr.mxu1 %v2276_v0 }
 0x685   :  { %v2164_v2 = vpop.eup %2163 }
 0x686   :  { %v1671_v3 = vsel %vm320_vm1, %v2164_v2, 0.0 }
 0x687   :  { %1672 = vadd.xlane.f32.xlu0 %v1671_v3 }
 0x694   :  { %1676 = vrot.lane.b32.xlu1 %v2479_v61, %s2280_s2 }
 0x69d   :  { %1511 = vrot.lane.b32.xlu0 %v2479_v61, %s2278_s12 }
 0x70c   :  { %v1342_v4 = vpop.xlane.xlu0 %1341 }
 0x70d   :  { %2165 = vrcp.f32 %v1342_v4 }
 0x710   :  { %v1508_v5 = vpop.xlane.xlu1 %1507 }
 0x711   :  { %2167 = vrcp.f32 %v1508_v5 }
 0x714   :  { %v1673_v6 = vpop.xlane.xlu0 %1672  ;;  %v1677_v61 = vpop.permute.xlu1 %1676 }
 0x715   :  { %2169 = vrcp.f32 %v1673_v6 }
 0x717   :  { %v2166_v7 = vpop.eup %2165 }
 0x718   :  { %v1344_v8 = vmul.f32 %v2166_v7, %v2158_v62  ;;  %v1512_v9 = vpop.permute.xlu0 %1511 }
 0x71a   :  { %2014 = vmatmul.mubr.msk.f32.vlgmr.msra.gmra.mrb[18].mxu1 %vm320_vm1, %v1344_v8 }
 0x71b   :  { %v2168_v10 = vpop.eup %2167  ;;  %2022 = vmatpush3.msra.mxu1 %v1512_v9  ;;  %2023 = vmatprep.mubr.msk.f32.mxu1 %vm2277_vm0, %v2276_v0 }
 0x71c   :  { %v1510_v11 = vmul.f32 %v2168_v10, %v2162_v48  ;;  %2031 = vmatprep.subr.mxu1 %v2276_v0 }
 0x71e   :  { %2024 = vmatmul.mubr.msk.f32.vlgmr.msra.gmra.mrb[20].mxu1 %vm320_vm1, %v1510_v11 }
 0x71f   :  { %v2170_v12 = vpop.eup %2169  ;;  %2032 = vmatpush3.msra.mxu1 %v1677_v61  ;;  %2033 = vmatprep.mubr.msk.f32.mxu1 %vm2277_vm0, %v2276_v0  ;;  %v1888_v0 = vld [vmem:[%s2590_s4] ss:$0 sm:$0xff]  ;;  %s2284_s4 = smov [#allocation8]  }
 0x720   :  { %v1675_v13 = vmul.f32 %v2170_v12, %v2164_v2  ;;  %s1861_s20 = sshll.u32 %s2284_s4, 4  ;;  %s1862_s20 = int_to_ptr.vmem [resolvable:$true] %s1861_s20 }
 0x721   :  { %s2241_s5 = scalar_lea.vmem %s1862_s20, 256  ;;  %p2246_p11 = scmp.lt.s32.totalorder %s1862_s20, %s1862_s20 }
 0x722   :  { %2034 = vmatmul.mubr.msk.f32.vlgmr.msra.gmra.mrb[22].mxu1 %vm320_vm1, %v1675_v13  ;;  %p2242_p10 = scmp.ne.s32.totalorder %s1862_s20, %s2241_s5  ;;  %p2247_p12 = scmp.lt.s32.totalorder %s2241_s5, %s2241_s5 }
 0x724   :  { %p2248_p13 = por %p2247_p12, %p2246_p11 }
 0x726   :  { %p2249_p0 = pnand %p2248_p13, %p2242_p10 }
 0x754   :  { %v1252_v14 = vpop.f32.mrb[16].mxu1 }
 0x755   :  { %v2005_v15 = vpop.f32.mrb[17].mxu1 }
 0x7ed   :  { %v1418_v16 = vpop.f32.mrb[18].mxu1 }
 0x7ee   :  { %1753 = vrot.lane.b32.xlu1 %v1418_v16, %s2274_s21  ;;  %v2015_v17 = vpop.f32.mrb[19].mxu1 }
 0x7f1   :  { %v1583_v18 = vpop.f32.mrb[20].mxu1 }
 0x7f2   :  { %1757 = vrot.lane.b32.xlu0 %v1583_v18, %s2282_s14  ;;  %v2025_v19 = vpop.f32.mrb[21].mxu1 }
 0x7f5   :  { %v1748_v20 = vpop.f32.mrb[22].mxu1 }
 0x7f6   :  { %1761 = vrot.lane.b32.xlu1 %v1748_v20, %s2283_s15  ;;  %v2035_v21 = vpop.f32.mrb[23].mxu1 }
 0x811   :  { %1069 = vadd.xlane.f32.xlu0 %v2524_v32 }
 0x860   :  { %v1754_v22 = vpop.permute.xlu1 %1753 }
 0x861   :  { %v1764_v25 = vsel %vm320_vm1, %v1252_v14, %v1754_v22 }
 0x864   :  { %v1758_v23 = vpop.permute.xlu0 %1757 }
 0x865   :  { %v1765_v26 = vsel %vm990_vm2, %v1764_v25, %v1758_v23 }
 0x868   :  { %v1762_v28 = vpop.permute.xlu1 %1761 }
 0x869   :  { %v1766_v29 = vsel %vm992_vm3, %v1765_v26, %v1762_v28 }
 0x86a   :  { %2045 = vmatmul.mubr.msk.f32.vlgmr.msra.gmra.mrb[18].mxu0 %vm994_vm4, %v1766_v29 }
 0x89e   :  { %v1070_v31 = vpop.xlane.xlu0 %1069 }
 0x89f   :  { %v1071_v33 = vmul.f32 0.03125, %v1070_v31 }
 0x8a1   :  { %v1072_v38 = vsub.f32 %v2524_v32, %v1071_v33 }
 0x8a3   :  { %v1073_v40 = vmul.f32 %v1874_v34, %v1072_v38 }
 0x8a5   :  { %v1074_v37 = vmul.f32 %v1073_v40, %v1073_v40 }
 0x8a7   :  { %1075 = vadd.xlane.f32.xlu0 %v1074_v37 }
 0x934   :  { %v1076_v42 = vpop.xlane.xlu0 %1075 }
 0x935   :  { %v1077_v39 = vmul.f32 0.03125, %v1076_v42 }
 0x937   :  { %v1078_v43 = vadd.f32 1e-05, %v1077_v39 }
 0x939   :  { %2171 = vrsqrt.f32 %v1078_v43 }
 0x93d   :  { %v1836_v36 = vpop.f32.mrb[18].mxu0 }
 0x93e   :  { %v1840_v24 = vadd.f32 %v1836_v36, %v308_v51  ;;  %v2046_v46 = vpop.f32.mrb[19].mxu0 }
 0x940   :  { %1841 = vadd.xlane.f32.xlu1 %v1840_v24 }
 0x943   :  { %v2172_v47 = vpop.eup %2171 }
 0x944   :  { %v1080_v32 = vmul.f32 %v2172_v47, %v1073_v40 }
 0x946   :  { %v1087_v50 = vmul.f32 %v1888_v0, %v1080_v32 }
 0x948   :  { %v1094_v56 = vadd.f32 %v1889_v49, %v1087_v50 }
 0x94a   :  { %1095 = vst [vmem:[#allocation8] sm:$0xff] %v1094_v56 }
 0x9cd   :  { %v1842_v53 = vpop.xlane.xlu1 %1841 }
 0x9ce   :  { %v1843_v27 = vmul.f32 0.03125, %v1842_v53 }
 0x9d0   :  { %v1844_v35 = vsub.f32 %v1840_v24, %v1843_v27 }
 0x9d2   :  { %v1845_v57 = vmul.f32 %v1874_v34, %v1844_v35 }
 0x9d4   :  { %v1846_v58 = vmul.f32 %v1845_v57, %v1845_v57 }
 0x9d6   :  { %1847 = vadd.xlane.f32.xlu0 %v1846_v58 }
 0xa63   :  { %v1848_v59 = vpop.xlane.xlu0 %1847 }
 0xa64   :  { %v1849_v60 = vmul.f32 0.03125, %v1848_v59 }
 0xa66   :  { %v1850_v41 = vadd.f32 1e-05, %v1849_v60 }
 0xa68   :  { %2173 = vrsqrt.f32 %v1850_v41 }
 0xa72   :  { %v2174_v55 = vpop.eup %2173 }
 0xa73   :  { %v1852_v62 = vmul.f32 %v2174_v55, %v1845_v57 }
 0xa75   :  { %v1853_v63 = vmul.f32 %v1888_v0, %v1852_v62 }
 0xa77   :  { %v1854_v44 = vadd.f32 %v1889_v49, %v1853_v63 }
 0xa79   :  { %1855 = vst [vmem:[#allocation8 + $0x8] sm:$0xff] %v1854_v44 }
 0xa7a   :  { %2252 = shalt.err (!%p2249_p0)
}
 0xa7b   :  { %s2253_s24 = scalar_lea.hbm %s2592_s6, 256 }
 0xa7c   :  { %p2254_p1 = scmp.ne.s32.totalorder %s2592_s6, %s2253_s24  ;;  %p2257_p2 = scmp.lt.u32.totalorder %s2253_s24, %s2592_s6 }
 0xa7e   :  { %p2259_p3 = pnand %p2257_p2, %p2254_p1 }
 0xa80   :  { %2262 = shalt.err (!%p2259_p3)
}
 0xa81   :  { %1867 = dma.vmem_to_hbm [thread:$0]  %s1862_s20, 256, %s2592_s6, [#allocation4], %s2273_s1, %s2273_s1, %s2274_s21  }
 0xa82   :  { %2267 = dma.done.wait [#allocation4], 256  }
 0xa83   :  { %2268 = vsyncadd [#allocation4], 4294967040 }
 0xa84   :  { %1871 = vsyncpa [#allocation3], 1 }
 0xa85   :  { %1872 = vsyncpa [#allocation6], 1 }
 0xa86   :  { %1873 = vsyncpa [#allocation4], 1 }

// kernel: tpu_custom_call.1
= control target key start
LH: loop header
LB: loop body
LE: loop exit
PB: predicated region body
PF: predicated region fallthrough
CT: control target
= control target key end

     0   :  { %11 = vsyncpa [#allocation3], 0  ;;  %s2586_s0 = inlined_call_operand.hbm [shape: f32[16,128], index: 0, kind: input, shape index: {}]   ;;  %s2587_s1 = inlined_call_operand.hbm [shape: f32[128,512], index: 1, kind: input, shape index: {}]   ;;  %s2588_s2 = inlined_call_operand.vmem [shape: f32[1,512], index: 2, kind: input, shape index: {}]   ;;  %s2589_s3 = inlined_call_operand.hbm [shape: f32[32,128], index: 3, kind: input, shape index: {}]   ;;  %s2590_s4 = inlined_call_operand.vmem [shape: f32[1,128], index: 4, kind: input, shape index: {}]   ;;  %s2591_s5 = inlined_call_operand.vmem [shape: f32[1,128], index: 5, kind: input, shape index: {}]   ;;  %s2592_s6 = inlined_call_operand.hbm [shape: f32[16,128], index: 6, kind: output, shape index: {}]  }
   0x1   :  { %12 = vsyncpa [#allocation6], 0 }
   0x2   :  { %13 = vsyncpa [#allocation4], 0  ;;  %s2269_s21 = smov [#allocation5]   ;;  %s2175_s25 = scalar_lea.hbm %s2587_s1, 8192 }
   0x3   :  { %s31_s22 = sshll.u32 %s2269_s21, 4  ;;  %p2176_p0 = scmp.ne.s32.totalorder %s2587_s1, %s2175_s25  ;;  %s32_s22 = int_to_ptr.vmem [resolvable:$true] %s31_s22 }
   0x4   :  { %p2179_p1 = scmp.lt.u32.totalorder %s2175_s25, %s2587_s1 }
   0x6   :  { %p2181_p2 = pnand %p2179_p1, %p2176_p0 }
   0x8   :  { %2184 = shalt.err (!%p2181_p2)
}
   0x9   :  { %s2185_s30 = scalar_lea.vmem %s32_s22, 8192  ;;  %p2190_p4 = scmp.lt.s32.totalorder %s32_s22, %s32_s22 }
   0xa   :  { %p2186_p3 = scmp.ne.s32.totalorder %s32_s22, %s2185_s30  ;;  %p2191_p5 = scmp.lt.s32.totalorder %s2185_s30, %s2185_s30 }
   0xc   :  { %p2192_p6 = por %p2191_p5, %p2190_p4 }
   0xe   :  { %p2193_p7 = pnand %p2192_p6, %p2186_p3 }
  0x10   :  { %2196 = shalt.err (!%p2193_p7)
}
  0x11   :  { %s2270_s7 = smov 512   ;;  %s2271_s8 = smov 32  }
  0x12   :  { %37 = dma.hbm_to_vmem [thread:$0]  %s2587_s1, 8192, %s32_s22, [#allocation6], %s2270_s7, %s2270_s7, %s2271_s8  }
  0x13   :  { %s2272_s11 = smov [#allocation2]   ;;  %s2197_s15 = scalar_lea.hbm %s2586_s0, 256 }
  0x14   :  { %s19_s12 = sshll.u32 %s2272_s11, 4  ;;  %p2198_p8 = scmp.ne.s32.totalorder %s2586_s0, %s2197_s15  ;;  %s20_s12 = int_to_ptr.vmem [resolvable:$true] %s19_s12 }
  0x15   :  { %p2201_p9 = scmp.lt.u32.totalorder %s2197_s15, %s2586_s0 }
  0x17   :  { %p2203_p10 = pnand %p2201_p9, %p2198_p8 }
  0x19   :  { %2206 = shalt.err (!%p2203_p10)
}
  0x1a   :  { %s2207_s20 = scalar_lea.vmem %s20_s12, 256  ;;  %p2212_p12 = scmp.lt.s32.totalorder %s20_s12, %s20_s12 }
  0x1b   :  { %p2208_p11 = scmp.ne.s32.totalorder %s20_s12, %s2207_s20  ;;  %p2213_p13 = scmp.lt.s32.totalorder %s2207_s20, %s2207_s20 }
  0x1d   :  { %p2214_p0 = por %p2213_p13, %p2212_p12 }
  0x1f   :  { %p2215_p1 = pnand %p2214_p0, %p2208_p11 }
  0x21   :  { %2218 = shalt.err (!%p2215_p1)
}
  0x22   :  { %s2273_s1 = smov 128   ;;  %s2274_s21 = smov 8  }
  0x23   :  { %25 = dma.hbm_to_vmem [thread:$0]  %s2586_s0, 256, %s20_s12, [#allocation3], %s2273_s1, %s2273_s1, %s2274_s21  }
  0x24   :  { %s2275_s24 = smov [#allocation7]   ;;  %s2219_s28 = scalar_lea.hbm %s2589_s3, 512 }
  0x25   :  { %s45_s25 = sshll.u32 %s2275_s24, 4  ;;  %p2220_p2 = scmp.ne.s32.totalorder %s2589_s3, %s2219_s28  ;;  %s46_s25 = int_to_ptr.vmem [resolvable:$true] %s45_s25 }
  0x26   :  { %p2223_p3 = scmp.lt.u32.totalorder %s2219_s28, %s2589_s3 }
  0x28   :  { %p2225_p4 = pnand %p2223_p3, %p2220_p2 }
  0x2a   :  { %2228 = shalt.err (!%p2225_p4)
}
  0x2b   :  { %s2229_s9 = scalar_lea.vmem %s46_s25, 512  ;;  %p2234_p6 = scmp.lt.s32.totalorder %s46_s25, %s46_s25 }
  0x2c   :  { %p2230_p5 = scmp.ne.s32.totalorder %s46_s25, %s2229_s9  ;;  %p2235_p7 = scmp.lt.s32.totalorder %s2229_s9, %s2229_s9 }
  0x2e   :  { %p2236_p8 = por %p2235_p7, %p2234_p6 }
  0x30   :  { %p2237_p9 = pnand %p2236_p8, %p2230_p5 }
  0x32   :  { %2240 = shalt.err (!%p2237_p9)
}
  0x33   :  { %51 = dma.hbm_to_vmem [thread:$0]  %s2589_s3, 512, %s46_s25, [#allocation6], %s2273_s1, %s2273_s1, %s2274_s21  }
  0x34   :  { %2263 = dma.done.wait [#allocation3], 256  }
  0x35   :  { %2264 = vsyncadd [#allocation3], 4294967040 }
  0x36   :  { %2265 = dma.done.wait [#allocation6], 8704  }
  0x37   :  { %2266 = vsyncadd [#allocation6], 4294958592  ;;  %v2276_v0 = vmov 0.0   ;;  %v68_v1 = vld [vmem:[#allocation5 + $0x8] sm:$0xff]  ;;  %v67_v3 = vld [vmem:[#allocation5] sm:$0xff]  ;;  %vm2277_vm0 = vmmov 0  }
  0x38   :  { %217 = vmatprep.mubr.f32.mxu0 %v2276_v0  ;;  %294 = vmatprep.mubr.f32.mxu1 %v2276_v0  ;;  %v72_v2 = vld [vmem:[#allocation5 + $0x28] sm:$0xff]  ;;  %v71_v5 = vld [vmem:[#allocation5 + $0x20] sm:$0xff]  ;;  %v70_v28 = vld [vmem:[#allocation5 + $0x18] sm:$0xff]  ;;  %vm320_vm1 = vcmask 64512   ;;  %s2278_s12 = smov 112   ;;  %s2279_s13 = smov 120  }
  0x39   :  { %v2047_v4 = vpack.c.bf16 %v72_v2, %v68_v1  ;;  %v76_v6 = vld [vmem:[#allocation5 + $0x48] sm:$0xff]  ;;  %v2049_v8 = vpack.c.bf16 %v71_v5, %v67_v3  ;;  %v75_v10 = vld [vmem:[#allocation5 + $0x40] sm:$0xff]  ;;  %v74_v29 = vld [vmem:[#allocation5 + $0x38] sm:$0xff]  ;;  %s2282_s14 = smov 16   ;;  %s2283_s15 = smov 24   ;;  %vm990_vm2 = vcmask 130048  }
  0x3a   :  { %v80_v7 = vld [vmem:[#allocation5 + $0x68] sm:$0xff]  ;;  %v79_v11 = vld [vmem:[#allocation5 + $0x60] sm:$0xff]  ;;  %v69_v30 = vld [vmem:[#allocation5 + $0x10] sm:$0xff]  ;;  %v2079_v32 = vpack.c.bf16 %v74_v29, %v70_v28  ;;  %vm992_vm3 = vcmask 195584   ;;  %vm994_vm4 = vcmask 261120  }
  0x3b   :  { %v2051_v9 = vpack.c.bf16 %v80_v7, %v76_v6  ;;  %v84_v12 = vld [vmem:[#allocation5 + $0x88] sm:$0xff]  ;;  %2048 = vmatprep.subr.bf16.mxu0 %v2047_v4  ;;  %v2053_v14 = vpack.c.bf16 %v79_v11, %v75_v10  ;;  %v83_v16 = vld [vmem:[#allocation5 + $0x80] sm:$0xff]  ;;  %v73_v33 = vld [vmem:[#allocation5 + $0x30] sm:$0xff] }
  0x3c   :  { %v88_v13 = vld [vmem:[#allocation5 + $0xa8] sm:$0xff]  ;;  %2050 = vmatpush1.bf16.msra.mxu0 %v2049_v8  ;;  %v87_v17 = vld [vmem:[#allocation5 + $0xa0] sm:$0xff]  ;;  %v78_v34 = vld [vmem:[#allocation5 + $0x58] sm:$0xff]  ;;  %v2081_v37 = vpack.c.bf16 %v73_v33, %v69_v30  ;;  %2080 = vmatprep.subr.bf16.mxu1 %v2079_v32 }
  0x3d   :  { %2052 = vmatprep.subr.bf16.mxu0 %v2051_v9  ;;  %v2055_v15 = vpack.c.bf16 %v88_v13, %v84_v12  ;;  %v92_v18 = vld [vmem:[#allocation5 + $0xc8] sm:$0xff]  ;;  %v2057_v20 = vpack.c.bf16 %v87_v17, %v83_v16  ;;  %v91_v22 = vld [vmem:[#allocation5 + $0xc0] sm:$0xff]  ;;  %v82_v35 = vld [vmem:[#allocation5 + $0x78] sm:$0xff] }
  0x3e   :  { %v96_v19 = vld [vmem:[#allocation5 + $0xe8] sm:$0xff]  ;;  %v95_v23 = vld [vmem:[#allocation5 + $0xe0] sm:$0xff]  ;;  %v2083_v38 = vpack.c.bf16 %v82_v35, %v78_v34  ;;  %v77_v39 = vld [vmem:[#allocation5 + $0x50] sm:$0xff]  ;;  %2082 = vmatpush1.bf16.msra.mxu1 %v2081_v37 }
  0x3f   :  { %v2059_v21 = vpack.c.bf16 %v96_v19, %v92_v18  ;;  %v100_v24 = vld [vmem:[#allocation5 + $0x108] sm:$0xff]  ;;  %v99_v26 = vld [vmem:[#allocation5 + $0x100] sm:$0xff]  ;;  %v2061_v31 = vpack.c.bf16 %v95_v23, %v91_v22  ;;  %v81_v40 = vld [vmem:[#allocation5 + $0x70] sm:$0xff] }
  0x40   :  { %2054 = vmatpush1.bf16.msra.mxu0 %v2053_v14  ;;  %v104_v25 = vld [vmem:[#allocation5 + $0x128] sm:$0xff]  ;;  %v103_v27 = vld [vmem:[#allocation5 + $0x120] sm:$0xff]  ;;  %v86_v41 = vld [vmem:[#allocation5 + $0x98] sm:$0xff]  ;;  %v2085_v45 = vpack.c.bf16 %v81_v40, %v77_v39  ;;  %2084 = vmatprep.subr.bf16.mxu1 %v2083_v38 }
  0x41   :  { %2056 = vmatprep.subr.bf16.mxu0 %v2055_v15  ;;  %v2063_v36 = vpack.c.bf16 %v104_v25, %v100_v24  ;;  %v108_v42 = vld [vmem:[#allocation5 + $0x148] sm:$0xff]  ;;  %v90_v44 = vld [vmem:[#allocation5 + $0xb8] sm:$0xff]  ;;  %v2065_v46 = vpack.c.bf16 %v103_v27, %v99_v26  ;;  %v107_v47 = vld [vmem:[#allocation5 + $0x140] sm:$0xff] }
  0x42   :  { %v112_v43 = vld [vmem:[#allocation5 + $0x168] sm:$0xff]  ;;  %v2087_v48 = vpack.c.bf16 %v90_v44, %v86_v41  ;;  %v85_v49 = vld [vmem:[#allocation5 + $0x90] sm:$0xff]  ;;  %v111_v52 = vld [vmem:[#allocation5 + $0x160] sm:$0xff]  ;;  %2086 = vmatpush1.bf16.msra.mxu1 %v2085_v45 }
  0x43   :  { %v89_v50 = vld [vmem:[#allocation5 + $0xb0] sm:$0xff]  ;;  %v2067_v51 = vpack.c.bf16 %v112_v43, %v108_v42  ;;  %v94_v53 = vld [vmem:[#allocation5 + $0xd8] sm:$0xff]  ;;  %v116_v55 = vld [vmem:[#allocation5 + $0x188] sm:$0xff]  ;;  %v2069_v58 = vpack.c.bf16 %v111_v52, %v107_v47 }
  0x44   :  { %2058 = vmatpush1.bf16.msra.mxu0 %v2057_v20  ;;  %v98_v54 = vld [vmem:[#allocation5 + $0xf8] sm:$0xff]  ;;  %v120_v56 = vld [vmem:[#allocation5 + $0x1a8] sm:$0xff]  ;;  %v2089_v57 = vpack.c.bf16 %v89_v50, %v85_v49  ;;  %v115_v59 = vld [vmem:[#allocation5 + $0x180] sm:$0xff]  ;;  %2088 = vmatprep.subr.bf16.mxu1 %v2087_v48 }
  0x45   :  { %2060 = vmatprep.subr.bf16.mxu0 %v2059_v21  ;;  %v2091_v60 = vpack.c.bf16 %v98_v54, %v94_v53  ;;  %v93_v61 = vld [vmem:[#allocation5 + $0xd0] sm:$0xff]  ;;  %v2071_v63 = vpack.c.bf16 %v120_v56, %v116_v55  ;;  %v119_v1 = vld [vmem:[#allocation5 + $0x1a0] sm:$0xff]  ;;  %v102_v2 = vld [vmem:[#allocation5 + $0x118] sm:$0xff] }
  0x46   :  { %v97_v62 = vld [vmem:[#allocation5 + $0xf0] sm:$0xff]  ;;  %v106_v3 = vld [vmem:[#allocation5 + $0x138] sm:$0xff]  ;;  %v124_v4 = vld [vmem:[#allocation5 + $0x1c8] sm:$0xff]  ;;  %2090 = vmatpush1.bf16.msra.mxu1 %v2089_v57  ;;  %v2073_v7 = vpack.c.bf16 %v119_v1, %v115_v59 }
  0x47   :  { %v128_v5 = vld [vmem:[#allocation5 + $0x1e8] sm:$0xff]  ;;  %v2093_v6 = vpack.c.bf16 %v97_v62, %v93_v61  ;;  %v123_v8 = vld [vmem:[#allocation5 + $0x1c0] sm:$0xff]  ;;  %2092 = vmatprep.subr.bf16.mxu1 %v2091_v60  ;;  %v2095_v9 = vpack.c.bf16 %v106_v3, %v102_v2  ;;  %v101_v10 = vld [vmem:[#allocation5 + $0x110] sm:$0xff] }
  0x48   :  { %2062 = vmatpush1.bf16.msra.mxu0 %v2061_v31  ;;  %v105_v11 = vld [vmem:[#allocation5 + $0x130] sm:$0xff]  ;;  %v2075_v12 = vpack.c.bf16 %v128_v5, %v124_v4  ;;  %v127_v13 = vld [vmem:[#allocation5 + $0x1e0] sm:$0xff]  ;;  %v110_v14 = vld [vmem:[#allocation5 + $0x158] sm:$0xff] }
  0x49   :  { %2064 = vmatprep.subr.bf16.mxu0 %v2063_v36  ;;  %v114_v15 = vld [vmem:[#allocation5 + $0x178] sm:$0xff]  ;;  %v2097_v16 = vpack.c.bf16 %v105_v11, %v101_v10  ;;  %v2077_v17 = vpack.c.bf16 %v127_v13, %v123_v8  ;;  %v109_v19 = vld [vmem:[#allocation5 + $0x150] sm:$0xff]  ;;  %v133_v36 = vlaneseq }
  0x4a   :  { %2094 = vmatpush1.bf16.msra.mxu1 %v2093_v6  ;;  %v2099_v18 = vpack.c.bf16 %v114_v15, %v110_v14  ;;  %v113_v20 = vld [vmem:[#allocation5 + $0x170] sm:$0xff]  ;;  %v118_v21 = vld [vmem:[#allocation5 + $0x198] sm:$0xff] }
  0x4b   :  { %2096 = vmatprep.subr.bf16.mxu1 %v2095_v9  ;;  %v122_v22 = vld [vmem:[#allocation5 + $0x1b8] sm:$0xff]  ;;  %v2101_v23 = vpack.c.bf16 %v113_v20, %v109_v19  ;;  %v2364_v24 = vld [vmem:[#allocation2] sm:$0xff]  ;;  %v2381_v37 = vshrl.u32 %v133_v36, 7 }
  0x4c   :  { %2066 = vmatpush1.bf16.msra.mxu0 %v2065_v46  ;;  %v2103_v25 = vpack.c.bf16 %v122_v22, %v118_v21  ;;  %v117_v26 = vld [vmem:[#allocation5 + $0x190] sm:$0xff]  ;;  %v126_v28 = vld [vmem:[#allocation5 + $0x1d8] sm:$0xff] }
  0x4d   :  { %2068 = vmatprep.subr.bf16.mxu0 %v2067_v51  ;;  %v121_v27 = vld [vmem:[#allocation5 + $0x1b0] sm:$0xff]  ;;  %v130_v29 = vld [vmem:[#allocation5 + $0x1f8] sm:$0xff]  ;;  %v139_v38 = vsub.s32 1, %v2381_v37  ;;  %v135_v40 = vsub.s32 0, %v2381_v37  ;;  %v143_v46 = vsub.s32 2, %v2381_v37 }
  0x4e   :  { %2098 = vmatpush1.bf16.msra.mxu1 %v2097_v16  ;;  %v2105_v30 = vpack.c.bf16 %v121_v27, %v117_v26  ;;  %v2107_v31 = vpack.c.bf16 %v130_v29, %v126_v28  ;;  %v125_v32 = vld [vmem:[#allocation5 + $0x1d0] sm:$0xff]  ;;  %v2372_v35 = vld [vmem:[#allocation2 + $0x8] sm:$0xff] }
  0x4f   :  { %2100 = vmatprep.subr.bf16.mxu1 %v2099_v18  ;;  %v129_v33 = vld [vmem:[#allocation5 + $0x1f0] sm:$0xff] }
  0x50   :  { %2070 = vmatpush1.bf16.msra.mxu0 %v2069_v58  ;;  %v2109_v34 = vpack.c.bf16 %v129_v33, %v125_v32  ;;  %v2387_v39 = vld [vmem:[%s2588_s2] sm:$0xf]  ;;  %s2280_s2 = smov 104  }
  0x51   :  { %2072 = vmatprep.subr.bf16.mxu0 %v2071_v63  ;;  %v2391_v41 = vrot.slane %v2387_v39, %v139_v38  ;;  %v2394_v44 = vrot.slane %v2387_v39, %v135_v40  ;;  %v2406_v48 = vrot.slane %v2387_v39, %v143_v46 }
  0x52   :  { %2102 = vmatpush1.bf16.msra.mxu1 %v2101_v23 }
  0x53   :  { %2104 = vmatprep.subr.bf16.mxu1 %v2103_v25 }
  0x54   :  { %2074 = vmatpush1.bf16.msra.mxu0 %v2073_v7 }
  0x55   :  { %2076 = vmatprep.subr.bf16.mxu0 %v2075_v12 }
  0x56   :  { %2106 = vmatpush1.bf16.msra.mxu1 %v2105_v30 }
  0x57   :  { %2108 = vmatprep.subr.bf16.mxu1 %v2107_v31 }
  0x58   :  { %2078 = vmatpush1.bf16.msra.mxu0 %v2077_v17 }
  0x59   :  { %1955 = vmatprep.subr.mxu0 %v2276_v0 }
  0x5a   :  { %2110 = vmatpush1.bf16.msra.mxu1 %v2109_v34 }
  0x5b   :  { %218 = vmatmul.mubr.f32.vlgmr.msra.gmra.mrb[0].mxu0 %v2364_v24  ;;  %1945 = vmatprep.subr.mxu1 %v2276_v0 }
  0x5c   :  { %223 = vmatprep.mubr.f32.mxu0 %v2276_v0 }
  0x5d   :  { %295 = vmatmul.mubr.f32.vlgmr.msra.gmra.mrb[0].mxu1 %v2364_v24 }
  0x5e   :  { %300 = vmatprep.mubr.f32.mxu1 %v2276_v0 }
  0x5f   :  { %224 = vmatmul.mubr.f32.gmra.mrb[2].mxu0 %v2372_v35 }
  0x60   :  { %1957 = vmatprep.mubr.msk.f32.mxu0 %vm2277_vm0, %v2276_v0 }
  0x61   :  { %301 = vmatmul.mubr.f32.gmra.mrb[2].mxu1 %v2372_v35 }
  0x62   :  { %1947 = vmatprep.mubr.msk.f32.mxu1 %vm2277_vm0, %v2276_v0 }
 0x12e   :  { %v219_v42 = vpop.f32.mrb[0].mxu0 }
 0x12f   :  { %v221_v43 = vpop.f32.mrb[1].mxu0  ;;  %v220_v47 = vadd.f32 %v219_v42, %v2394_v44 }
 0x130   :  { %v222_v45 = vadd.f32 %v221_v43, %v2391_v41  ;;  %v296_v49 = vpop.f32.mrb[0].mxu1 }
 0x131   :  { %v2413_v50 = vadd.f32 %v296_v49, %v2406_v48  ;;  %v2415_v51 = vpop.f32.mrb[1].mxu1 }
 0x132   :  { %649 = vrot.lane.b32.xlu1 %v222_v45, %s2278_s12  ;;  %483 = vrot.lane.b32.xlu0 %v222_v45, %s2279_s13  ;;  %v2424_v54 = vpop.f32.mrb[2].mxu0 }
 0x133   :  { %1946 = vmatpush3.xpose.msk.msra.mxu1 %vm320_vm1, %v222_v45  ;;  %v2426_v55 = vpop.f32.mrb[3].mxu0 }
 0x134   :  { %1950 = vmatprep.subr.mxu1 %v2276_v0  ;;  %v2420_v52 = vpop.f32.mrb[2].mxu1 }
 0x135   :  { %v2422_v53 = vpop.f32.mrb[3].mxu1 }
 0x136   :  { %1948 = vmatmul.mubr.msk.f32.vlgmr.msra.gmra.mrb[4].mxu1 %vm320_vm1, %v220_v47  ;;  %647 = vrot.lane.b32.xlu1 %v220_v47, %s2278_s12 }
 0x137   :  { %481 = vrot.lane.b32.xlu0 %v220_v47, %s2279_s13  ;;  %1952 = vmatprep.mubr.msk.f32.mxu1 %vm2277_vm0, %v2276_v0 }
 0x138   :  { %1951 = vmatpush3.msra.mxu1 %v2413_v50 }
 0x139   :  { %1960 = vmatprep.subr.mxu1 %v2276_v0 }
 0x13a   :  { %812 = vrot.lane.b32.xlu1 %v220_v47, %s2280_s2 }
 0x13b   :  { %814 = vrot.lane.b32.xlu0 %v222_v45, %s2280_s2 }
 0x1a4   :  { %v484_v56 = vpop.permute.xlu0 %483  ;;  %v650_v57 = vpop.permute.xlu1 %649 }
 0x1a5   :  { %1956 = vmatpush3.xpose.msk.msra.mxu0 %vm320_vm1, %v484_v56 }
 0x1a6   :  { %1965 = vmatprep.subr.mxu0 %v2276_v0 }
 0x1a8   :  { %v648_v59 = vpop.permute.xlu1 %647 }
 0x1a9   :  { %v482_v58 = vpop.permute.xlu0 %481 }
 0x1aa   :  { %1958 = vmatmul.mubr.msk.f32.vlgmr.msra.gmra.mrb[4].mxu0 %vm320_vm1, %v482_v58 }
 0x1ab   :  { %1966 = vmatpush3.xpose.msk.msra.mxu0 %vm320_vm1, %v650_v57  ;;  %1967 = vmatprep.mubr.msk.f32.mxu0 %vm2277_vm0, %v2276_v0 }
 0x1ac   :  { %1975 = vmatprep.subr.mxu0 %v2276_v0  ;;  %v813_v61 = vpop.permute.xlu1 %812 }
 0x1ad   :  { %v815_v60 = vpop.permute.xlu0 %814 }
 0x1ae   :  { %1968 = vmatmul.mubr.msk.f32.vlgmr.msra.gmra.mrb[6].mxu0 %vm320_vm1, %v648_v59  ;;  %v228_v59 = vadd.f32 %v2426_v55, %v2391_v41 }
 0x1af   :  { %1976 = vmatpush3.xpose.msk.msra.mxu0 %vm320_vm1, %v815_v60  ;;  %1977 = vmatprep.mubr.msk.f32.mxu0 %vm2277_vm0, %v2276_v0  ;;  %v226_v60 = vadd.f32 %v2424_v54, %v2394_v44  ;;  %v2281_v44 = vmov 0.0|0.0  }
 0x1b0   :  { %2111 = vmatprep.subr.bf16.mxu0 %v2281_v44 }
 0x1b2   :  { %1978 = vmatmul.mubr.msk.f32.vlgmr.msra.gmra.mrb[8].mxu0 %vm320_vm1, %v813_v61  ;;  %v2479_v61 = vadd.f32 %v2420_v52, %v2406_v48  ;;  %v311_v48 = vld [vmem:[#allocation7 + $0x10] sm:$0xff]  ;;  %v312_v52 = vld [vmem:[#allocation7 + $0x18] sm:$0xff] }
 0x1b3   :  { %1993 = vmatprep.mubr.msk.f32.mxu0 %vm2277_vm0, %v2276_v0 }
 0x209   :  { %v393_v62 = vpop.f32.mrb[4].mxu1 }
 0x20a   :  { %v1949_v63 = vpop.f32.mrb[5].mxu1  ;;  %v397_v1 = vsel %vm320_vm1, %v393_v62, -inf }
 0x20b   :  { %398 = vmax.xlane.f32.xlu0 %v397_v1  ;;  %v310_v63 = vld [vmem:[#allocation7 + $0x8] sm:$0xff]  ;;  %v2115_v1 = vpack.c.bf16 %v312_v52, %v311_v48 }
 0x27d   :  { %v555_v2 = vpop.f32.mrb[4].mxu0 }
 0x27e   :  { %v1959_v3 = vpop.f32.mrb[5].mxu0  ;;  %v559_v4 = vsel %vm320_vm1, %v555_v2, -inf }
 0x27f   :  { %560 = vmax.xlane.f32.xlu1 %v559_v4 }
 0x281   :  { %v721_v5 = vpop.f32.mrb[6].mxu0 }
 0x282   :  { %v1969_v6 = vpop.f32.mrb[7].mxu0  ;;  %v725_v7 = vsel %vm320_vm1, %v721_v5, -inf }
 0x283   :  { %726 = vmax.xlane.f32.xlu0 %v725_v7 }
 0x285   :  { %v886_v8 = vpop.f32.mrb[8].mxu0 }
 0x286   :  { %v1979_v9 = vpop.f32.mrb[9].mxu0  ;;  %v890_v10 = vsel %vm320_vm1, %v886_v8, -inf }
 0x287   :  { %891 = vmax.xlane.f32.xlu0 %v890_v10 }
 0x290   :  { %571 = vrot.lane.b32.xlu1 %v2413_v50, %s2279_s13 }
 0x298   :  { %v399_v11 = vpop.xlane.xlu0 %398 }
 0x299   :  { %v400_v12 = vsub.f32 %v393_v62, %v399_v11  ;;  %v309_v62 = vld [vmem:[#allocation7] sm:$0xff] }
 0x29a   :  { %v2112_v54 = vpack.c.bf16 %v310_v63, %v309_v62 }
 0x29b   :  { %v401_v13 = vmul.f32 1.442695, %v400_v12 }
 0x29c   :  { %2113 = vmatpush3.bf16.msra.mxu0 %v2112_v54 }
 0x29d   :  { %2139 = vpow2.f32 %v401_v13  ;;  %2114 = vmatprep.subr.bf16.mxu0 %v2281_v44 }
 0x2a0   :  { %2116 = vmatpush3.bf16.msra.mxu0 %v2115_v1 }
 0x2a1   :  { %2006 = vmatprep.subr.mxu0 %v2276_v0 }
 0x2a7   :  { %v2140_v14 = vpop.eup %2139 }
 0x2a8   :  { %v403_v15 = vsel %vm320_vm1, %v2140_v14, 0.0 }
 0x2b4   :  { %404 = vadd.xlane.f32.xlu1 %v403_v15 }
 0x30c   :  { %v561_v16 = vpop.xlane.xlu1 %560 }
 0x30d   :  { %v562_v17 = vsub.f32 %v555_v2, %v561_v16 }
 0x30f   :  { %v563_v18 = vmul.f32 1.442695, %v562_v17 }
 0x310   :  { %v727_v19 = vpop.xlane.xlu0 %726  ;;  %v572_v32 = vpop.permute.xlu1 %571 }
 0x311   :  { %2141 = vpow2.f32 %v563_v18  ;;  %v728_v20 = vsub.f32 %v721_v5, %v727_v19 }
 0x313   :  { %v729_v21 = vmul.f32 1.442695, %v728_v20 }
 0x314   :  { %v892_v22 = vpop.xlane.xlu0 %891 }
 0x315   :  { %2143 = vpow2.f32 %v729_v21  ;;  %v893_v23 = vsub.f32 %v886_v8, %v892_v22 }
 0x317   :  { %v894_v25 = vmul.f32 1.442695, %v893_v23 }
 0x319   :  { %2145 = vpow2.f32 %v894_v25  ;;  %v147_v25 = vsub.s32 3, %v2381_v37 }
 0x31b   :  { %v2142_v26 = vpop.eup %2141 }
 0x31c   :  { %v565_v27 = vsel %vm320_vm1, %v2142_v26, 0.0 }
 0x31d   :  { %566 = vadd.xlane.f32.xlu0 %v565_v27  ;;  %v2519_v27 = vrot.slane %v2387_v39, %v147_v25 }
 0x31f   :  { %v2144_v28 = vpop.eup %2143 }
 0x320   :  { %v731_v29 = vsel %vm320_vm1, %v2144_v28, 0.0 }
 0x321   :  { %732 = vadd.xlane.f32.xlu1 %v731_v29  ;;  %v299_v29 = vadd.f32 %v2415_v51, %v2519_v27 }
 0x323   :  { %v2146_v30 = vpop.eup %2145 }
 0x324   :  { %v896_v31 = vsel %vm320_vm1, %v2146_v30, 0.0 }
 0x325   :  { %897 = vadd.xlane.f32.xlu0 %v896_v31 }
 0x332   :  { %901 = vrot.lane.b32.xlu1 %v2413_v50, %s2280_s2 }
 0x33b   :  { %736 = vrot.lane.b32.xlu0 %v2413_v50, %s2278_s12 }
 0x341   :  { %v405_v33 = vpop.xlane.xlu1 %404 }
 0x342   :  { %2147 = vrcp.f32 %v405_v33 }
 0x34c   :  { %v2148_v34 = vpop.eup %2147 }
 0x34d   :  { %v407_v38 = vmul.f32 %v2148_v34, %v2140_v14 }
 0x34f   :  { %1953 = vmatmul.mubr.msk.f32.vlgmr.msra.gmra.mrb[6].mxu1 %vm320_vm1, %v407_v38 }
 0x350   :  { %1961 = vmatpush3.msra.mxu1 %v572_v32  ;;  %1962 = vmatprep.mubr.msk.f32.mxu1 %vm2277_vm0, %v2276_v0 }
 0x351   :  { %1970 = vmatprep.subr.mxu1 %v2276_v0 }
 0x3aa   :  { %v567_v40 = vpop.xlane.xlu0 %566 }
 0x3ab   :  { %2149 = vrcp.f32 %v567_v40 }
 0x3ae   :  { %v733_v42 = vpop.xlane.xlu1 %732 }
 0x3af   :  { %2151 = vrcp.f32 %v733_v42 }
 0x3b2   :  { %v898_v43 = vpop.xlane.xlu0 %897  ;;  %v902_v56 = vpop.permute.xlu1 %901 }
 0x3b3   :  { %2153 = vrcp.f32 %v898_v43 }
 0x3b5   :  { %v2150_v45 = vpop.eup %2149 }
 0x3b6   :  { %v569_v46 = vmul.f32 %v2150_v45, %v2142_v26  ;;  %v737_v47 = vpop.permute.xlu0 %736 }
 0x3b8   :  { %1963 = vmatmul.mubr.msk.f32.vlgmr.msra.gmra.mrb[8].mxu1 %vm320_vm1, %v569_v46 }
 0x3b9   :  { %v2152_v49 = vpop.eup %2151  ;;  %1971 = vmatpush3.msra.mxu1 %v737_v47  ;;  %1972 = vmatprep.mubr.msk.f32.mxu1 %vm2277_vm0, %v2276_v0 }
 0x3ba   :  { %v735_v50 = vmul.f32 %v2152_v49, %v2144_v28  ;;  %1980 = vmatprep.subr.mxu1 %v2276_v0 }
 0x3bc   :  { %1973 = vmatmul.mubr.msk.f32.vlgmr.msra.gmra.mrb[10].mxu1 %vm320_vm1, %v735_v50 }
 0x3bd   :  { %v2154_v57 = vpop.eup %2153  ;;  %1981 = vmatpush3.msra.mxu1 %v902_v56  ;;  %1982 = vmatprep.mubr.msk.f32.mxu1 %vm2277_vm0, %v2276_v0 }
 0x3be   :  { %v900_v58 = vmul.f32 %v2154_v57, %v2146_v30  ;;  %1996 = vmatprep.subr.mxu1 %v2276_v0  ;;  %v307_v30 = vadd.f32 %v299_v29, %v2364_v24 }
 0x3c0   :  { %1983 = vmatmul.mubr.msk.f32.vlgmr.msra.gmra.mrb[12].mxu1 %vm320_vm1, %v900_v58 }
 0x3c1   :  { %1998 = vmatprep.mubr.msk.f32.mxu1 %vm2277_vm0, %v2276_v0 }
 0x3c4   :  { %1997 = vmatpush3.xpose.msk.msra.mxu1 %vm320_vm1, %v228_v59 }
 0x3c5   :  { %2001 = vmatprep.subr.mxu1 %v2276_v0 }
 0x3c7   :  { %1999 = vmatmul.mubr.msk.f32.vlgmr.msra.gmra.mrb[14].mxu1 %vm320_vm1, %v226_v60 }
 0x3c8   :  { %2002 = vmatpush3.msra.mxu1 %v2479_v61  ;;  %2003 = vmatprep.mubr.msk.f32.mxu1 %vm2277_vm0, %v2276_v0 }
 0x3c9   :  { %2011 = vmatprep.subr.mxu1 %v2276_v0 }
 0x422   :  { %v477_v41 = vpop.f32.mrb[6].mxu1 }
 0x423   :  { %v1954_v55 = vpop.f32.mrb[7].mxu1 }
 0x48b   :  { %v643_v2 = vpop.f32.mrb[8].mxu1 }
 0x48c   :  { %978 = vrot.lane.b32.xlu1 %v643_v2, %s2274_s21  ;;  %v1964_v3 = vpop.f32.mrb[9].mxu1 }
 0x48f   :  { %v808_v4 = vpop.f32.mrb[10].mxu1 }
 0x490   :  { %982 = vrot.lane.b32.xlu0 %v808_v4, %s2282_s14  ;;  %v1974_v5 = vpop.f32.mrb[11].mxu1 }
 0x493   :  { %v973_v6 = vpop.f32.mrb[12].mxu1 }
 0x494   :  { %1258 = vrot.lane.b32.xlu0 %v228_v59, %s2279_s13  ;;  %986 = vrot.lane.b32.xlu1 %v973_v6, %s2283_s15  ;;  %v1984_v7 = vpop.f32.mrb[13].mxu1 }
 0x498   :  { %1424 = vrot.lane.b32.xlu0 %v228_v59, %s2278_s12  ;;  %1256 = vrot.lane.b32.xlu1 %v226_v60, %s2279_s13 }
 0x49a   :  { %v1168_v8 = vpop.f32.mrb[14].mxu1 }
 0x49b   :  { %v2000_v9 = vpop.f32.mrb[15].mxu1  ;;  %v1172_v10 = vsel %vm320_vm1, %v1168_v8, -inf }
 0x49c   :  { %1589 = vrot.lane.b32.xlu0 %v228_v59, %s2280_s2  ;;  %1422 = vrot.lane.b32.xlu1 %v226_v60, %s2278_s12 }
 0x4a0   :  { %1587 = vrot.lane.b32.xlu1 %v226_v60, %s2280_s2 }
 0x4bb   :  { %1173 = vmax.xlane.f32.xlu0 %v1172_v10 }
 0x4fe   :  { %v979_v11 = vpop.permute.xlu1 %978 }
 0x4ff   :  { %v989_v13 = vsel %vm320_vm1, %v477_v41, %v979_v11 }
 0x502   :  { %v983_v12 = vpop.permute.xlu0 %982 }
 0x503   :  { %v991_v14 = vsel %vm990_vm2, %v989_v13, %v983_v12 }
 0x506   :  { %v1259_v15 = vpop.permute.xlu0 %1258  ;;  %v987_v16 = vpop.permute.xlu1 %986 }
 0x507   :  { %v993_v17 = vsel %vm992_vm3, %v991_v14, %v987_v16 }
 0x508   :  { %1994 = vmatmul.mubr.msk.f32.vlgmr.msra.gmra.mrb[10].mxu0 %vm994_vm4, %v993_v17 }
 0x509   :  { %2007 = vmatpush3.xpose.msk.msra.mxu0 %vm320_vm1, %v1259_v15  ;;  %2008 = vmatprep.mubr.msk.f32.mxu0 %vm2277_vm0, %v2276_v0 }
 0x50a   :  { %v1425_v18 = vpop.permute.xlu0 %1424  ;;  %v1257_v19 = vpop.permute.xlu1 %1256  ;;  %2016 = vmatprep.subr.mxu0 %v2276_v0 }
 0x50c   :  { %2009 = vmatmul.mubr.msk.f32.vlgmr.msra.gmra.mrb[12].mxu0 %vm320_vm1, %v1257_v19 }
 0x50d   :  { %2017 = vmatpush3.xpose.msk.msra.mxu0 %vm320_vm1, %v1425_v18  ;;  %2018 = vmatprep.mubr.msk.f32.mxu0 %vm2277_vm0, %v2276_v0 }
 0x50e   :  { %v1590_v20 = vpop.permute.xlu0 %1589  ;;  %v1423_v21 = vpop.permute.xlu1 %1422  ;;  %2026 = vmatprep.subr.mxu0 %v2276_v0 }
 0x510   :  { %2019 = vmatmul.mubr.msk.f32.vlgmr.msra.gmra.mrb[14].mxu0 %vm320_vm1, %v1423_v21 }
 0x511   :  { %2027 = vmatpush3.xpose.msk.msra.mxu0 %vm320_vm1, %v1590_v20  ;;  %2028 = vmatprep.mubr.msk.f32.mxu0 %vm2277_vm0, %v2276_v0 }
 0x512   :  { %v1588_v22 = vpop.permute.xlu1 %1587  ;;  %2117 = vmatprep.subr.bf16.mxu0 %v2281_v44 }
 0x514   :  { %2029 = vmatmul.mubr.msk.f32.vlgmr.msra.gmra.mrb[16].mxu0 %vm320_vm1, %v1588_v22 }
 0x515   :  { %2119 = vmatpush3.bf16.msra.mxu0 %v2112_v54  ;;  %2044 = vmatprep.mubr.msk.f32.mxu0 %vm2277_vm0, %v2276_v0 }
 0x516   :  { %2120 = vmatprep.subr.bf16.mxu0 %v2281_v44 }
 0x519   :  { %2122 = vmatpush3.bf16.msra.mxu0 %v2115_v1 }
 0x548   :  { %v1174_v23 = vpop.xlane.xlu0 %1173 }
 0x549   :  { %v1175_v26 = vsub.f32 %v1168_v8, %v1174_v23 }
 0x54b   :  { %v1176_v28 = vmul.f32 1.442695, %v1175_v26 }
 0x54d   :  { %2155 = vpow2.f32 %v1176_v28 }
 0x557   :  { %v2156_v37 = vpop.eup %2155 }
 0x558   :  { %v1178_v45 = vsel %vm320_vm1, %v2156_v37, 0.0 }
 0x5db   :  { %v1064_v31 = vpop.f32.mrb[10].mxu0 }
 0x5dc   :  { %v2524_v32 = vadd.f32 %v1064_v31, %v307_v30  ;;  %v1995_v33 = vpop.f32.mrb[11].mxu0  ;;  %v316_v30 = vand.u32 127, %v133_v36 }
 0x5de   :  { %vm317_vm5 = vcmp.lt.s32.totalorder %v316_v30, 32 }
 0x5df   :  { %v1330_v34 = vpop.f32.mrb[12].mxu0 }
 0x5e0   :  { %v2010_v38 = vpop.f32.mrb[13].mxu0  ;;  %v1334_v40 = vsel %vm320_vm1, %v1330_v34, -inf }
 0x5e1   :  { %1335 = vmax.xlane.f32.xlu1 %v1334_v40 }
 0x5e3   :  { %v1496_v42 = vpop.f32.mrb[14].mxu0 }
 0x5e4   :  { %v2020_v39 = vpop.f32.mrb[15].mxu0  ;;  %v1500_v43 = vsel %vm320_vm1, %v1496_v42, -inf }
 0x5e5   :  { %1501 = vmax.xlane.f32.xlu0 %v1500_v43  ;;  %1179 = vadd.xlane.f32.xlu1 %v1178_v45  ;;  %v305_v45 = vadd.f32 %v2422_v53, %v2519_v27 }
 0x5e7   :  { %v1661_v51 = vpop.f32.mrb[16].mxu0 }
 0x5e8   :  { %v2030_v24 = vpop.f32.mrb[17].mxu0  ;;  %v1665_v46 = vsel %vm320_vm1, %v1661_v51, -inf }
 0x5e9   :  { %1666 = vmax.xlane.f32.xlu0 %v1665_v46 }
 0x5f6   :  { %1346 = vrot.lane.b32.xlu1 %v2479_v61, %s2279_s13 }
 0x66e   :  { %v1336_v47 = vpop.xlane.xlu1 %1335 }
 0x66f   :  { %v1337_v49 = vsub.f32 %v1330_v34, %v1336_v47  ;;  %v1874_v34 = vsel %vm317_vm5, 1.0, %v2276_v0 }
 0x671   :  { %v1338_v50 = vmul.f32 1.442695, %v1337_v49  ;;  %v1889_v49 = vld [vmem:[%s2591_s5] ss:$0 sm:$0xff] }
 0x672   :  { %v1180_v56 = vpop.xlane.xlu1 %1179  ;;  %v1502_v57 = vpop.xlane.xlu0 %1501 }
 0x673   :  { %2157 = vpow2.f32 %v1338_v50  ;;  %v1503_v58 = vsub.f32 %v1496_v42, %v1502_v57 }
 0x674   :  { %2159 = vrcp.f32 %v1180_v56 }
 0x675   :  { %v1504_v59 = vmul.f32 1.442695, %v1503_v58 }
 0x676   :  { %v1667_v60 = vpop.xlane.xlu0 %1666  ;;  %v1347_v52 = vpop.permute.xlu1 %1346 }
 0x677   :  { %2161 = vpow2.f32 %v1504_v59  ;;  %v1668_v41 = vsub.f32 %v1661_v51, %v1667_v60  ;;  %v308_v51 = vadd.f32 %v305_v45, %v2372_v35 }
 0x679   :  { %v1669_v55 = vmul.f32 1.442695, %v1668_v41 }
 0x67b   :  { %2163 = vpow2.f32 %v1669_v55 }
 0x67d   :  { %v2158_v62 = vpop.eup %2157 }
 0x67e   :  { %v2160_v63 = vpop.eup %2159  ;;  %v1340_v44 = vsel %vm320_vm1, %v2158_v62, 0.0 }
 0x67f   :  { %v1182_v54 = vmul.f32 %v2160_v63, %v2156_v37  ;;  %1341 = vadd.xlane.f32.xlu0 %v1340_v44 }
 0x681   :  { %v2162_v48 = vpop.eup %2161  ;;  %2004 = vmatmul.mubr.msk.f32.vlgmr.msra.gmra.mrb[16].mxu1 %vm320_vm1, %v1182_v54 }
 0x682   :  { %2012 = vmatpush3.msra.mxu1 %v1347_v52  ;;  %v1506_v1 = vsel %vm320_vm1, %v2162_v48, 0.0  ;;  %2013 = vmatprep.mubr.msk.f32.mxu1 %vm2277_vm0, %v2276_v0 }
 0x683   :  { %1507 = vadd.xlane.f32.xlu1 %v1506_v1  ;;  %2021 = vmatprep.subr.mxu1 %v2276_v0 }
 0x685   :  { %v2164_v2 = vpop.eup %2163 }
 0x686   :  { %v1671_v3 = vsel %vm320_vm1, %v2164_v2, 0.0 }
 0x687   :  { %1672 = vadd.xlane.f32.xlu0 %v1671_v3 }
 0x694   :  { %1676 = vrot.lane.b32.xlu1 %v2479_v61, %s2280_s2 }
 0x69d   :  { %1511 = vrot.lane.b32.xlu0 %v2479_v61, %s2278_s12 }
 0x70c   :  { %v1342_v4 = vpop.xlane.xlu0 %1341 }
 0x70d   :  { %2165 = vrcp.f32 %v1342_v4 }
 0x710   :  { %v1508_v5 = vpop.xlane.xlu1 %1507 }
 0x711   :  { %2167 = vrcp.f32 %v1508_v5 }
 0x714   :  { %v1673_v6 = vpop.xlane.xlu0 %1672  ;;  %v1677_v61 = vpop.permute.xlu1 %1676 }
 0x715   :  { %2169 = vrcp.f32 %v1673_v6 }
 0x717   :  { %v2166_v7 = vpop.eup %2165 }
 0x718   :  { %v1344_v8 = vmul.f32 %v2166_v7, %v2158_v62  ;;  %v1512_v9 = vpop.permute.xlu0 %1511 }
 0x71a   :  { %2014 = vmatmul.mubr.msk.f32.vlgmr.msra.gmra.mrb[18].mxu1 %vm320_vm1, %v1344_v8 }
 0x71b   :  { %v2168_v10 = vpop.eup %2167  ;;  %2022 = vmatpush3.msra.mxu1 %v1512_v9  ;;  %2023 = vmatprep.mubr.msk.f32.mxu1 %vm2277_vm0, %v2276_v0 }
 0x71c   :  { %v1510_v11 = vmul.f32 %v2168_v10, %v2162_v48  ;;  %2031 = vmatprep.subr.mxu1 %v2276_v0 }
 0x71e   :  { %2024 = vmatmul.mubr.msk.f32.vlgmr.msra.gmra.mrb[20].mxu1 %vm320_vm1, %v1510_v11 }
 0x71f   :  { %v2170_v12 = vpop.eup %2169  ;;  %2032 = vmatpush3.msra.mxu1 %v1677_v61  ;;  %2033 = vmatprep.mubr.msk.f32.mxu1 %vm2277_vm0, %v2276_v0  ;;  %v1888_v0 = vld [vmem:[%s2590_s4] ss:$0 sm:$0xff]  ;;  %s2284_s4 = smov [#allocation8]  }
 0x720   :  { %v1675_v13 = vmul.f32 %v2170_v12, %v2164_v2  ;;  %s1861_s20 = sshll.u32 %s2284_s4, 4  ;;  %s1862_s20 = int_to_ptr.vmem [resolvable:$true] %s1861_s20 }
 0x721   :  { %s2241_s5 = scalar_lea.vmem %s1862_s20, 256  ;;  %p2246_p11 = scmp.lt.s32.totalorder %s1862_s20, %s1862_s20 }
 0x722   :  { %2034 = vmatmul.mubr.msk.f32.vlgmr.msra.gmra.mrb[22].mxu1 %vm320_vm1, %v1675_v13  ;;  %p2242_p10 = scmp.ne.s32.totalorder %s1862_s20, %s2241_s5  ;;  %p2247_p12 = scmp.lt.s32.totalorder %s2241_s5, %s2241_s5 }
 0x724   :  { %p2248_p13 = por %p2247_p12, %p2246_p11 }
 0x726   :  { %p2249_p0 = pnand %p2248_p13, %p2242_p10 }
 0x754   :  { %v1252_v14 = vpop.f32.mrb[16].mxu1 }
 0x755   :  { %v2005_v15 = vpop.f32.mrb[17].mxu1 }
 0x7ed   :  { %v1418_v16 = vpop.f32.mrb[18].mxu1 }
 0x7ee   :  { %1753 = vrot.lane.b32.xlu1 %v1418_v16, %s2274_s21  ;;  %v2015_v17 = vpop.f32.mrb[19].mxu1 }
 0x7f1   :  { %v1583_v18 = vpop.f32.mrb[20].mxu1 }
 0x7f2   :  { %1757 = vrot.lane.b32.xlu0 %v1583_v18, %s2282_s14  ;;  %v2025_v19 = vpop.f32.mrb[21].mxu1 }
 0x7f5   :  { %v1748_v20 = vpop.f32.mrb[22].mxu1 }
 0x7f6   :  { %1761 = vrot.lane.b32.xlu1 %v1748_v20, %s2283_s15  ;;  %v2035_v21 = vpop.f32.mrb[23].mxu1 }
 0x811   :  { %1069 = vadd.xlane.f32.xlu0 %v2524_v32 }
 0x860   :  { %v1754_v22 = vpop.permute.xlu1 %1753 }
 0x861   :  { %v1764_v25 = vsel %vm320_vm1, %v1252_v14, %v1754_v22 }
 0x864   :  { %v1758_v23 = vpop.permute.xlu0 %1757 }
 0x865   :  { %v1765_v26 = vsel %vm990_vm2, %v1764_v25, %v1758_v23 }
 0x868   :  { %v1762_v28 = vpop.permute.xlu1 %1761 }
 0x869   :  { %v1766_v29 = vsel %vm992_vm3, %v1765_v26, %v1762_v28 }
 0x86a   :  { %2045 = vmatmul.mubr.msk.f32.vlgmr.msra.gmra.mrb[18].mxu0 %vm994_vm4, %v1766_v29 }
 0x89e   :  { %v1070_v31 = vpop.xlane.xlu0 %1069 }
 0x89f   :  { %v1071_v33 = vmul.f32 0.03125, %v1070_v31 }
 0x8a1   :  { %v1072_v38 = vsub.f32 %v2524_v32, %v1071_v33 }
 0x8a3   :  { %v1073_v40 = vmul.f32 %v1874_v34, %v1072_v38 }
 0x8a5   :  { %v1074_v37 = vmul.f32 %v1073_v40, %v1073_v40 }
 0x8a7   :  { %1075 = vadd.xlane.f32.xlu0 %v1074_v37 }
 0x934   :  { %v1076_v42 = vpop.xlane.xlu0 %1075 }
 0x935   :  { %v1077_v39 = vmul.f32 0.03125, %v1076_v42 }
 0x937   :  { %v1078_v43 = vadd.f32 1e-05, %v1077_v39 }
 0x939   :  { %2171 = vrsqrt.f32 %v1078_v43 }
 0x93d   :  { %v1836_v36 = vpop.f32.mrb[18].mxu0 }
 0x93e   :  { %v1840_v24 = vadd.f32 %v1836_v36, %v308_v51  ;;  %v2046_v46 = vpop.f32.mrb[19].mxu0 }
 0x940   :  { %1841 = vadd.xlane.f32.xlu1 %v1840_v24 }
 0x943   :  { %v2172_v47 = vpop.eup %2171 }
 0x944   :  { %v1080_v32 = vmul.f32 %v2172_v47, %v1073_v40 }
 0x946   :  { %v1087_v50 = vmul.f32 %v1888_v0, %v1080_v32 }
 0x948   :  { %v1094_v56 = vadd.f32 %v1889_v49, %v1087_v50 }
 0x94a   :  { %1095 = vst [vmem:[#allocation8] sm:$0xff] %v1094_v56 }
 0x9cd   :  { %v1842_v53 = vpop.xlane.xlu1 %1841 }
 0x9ce   :  { %v1843_v27 = vmul.f32 0.03125, %v1842_v53 }
 0x9d0   :  { %v1844_v35 = vsub.f32 %v1840_v24, %v1843_v27 }
 0x9d2   :  { %v1845_v57 = vmul.f32 %v1874_v34, %v1844_v35 }
 0x9d4   :  { %v1846_v58 = vmul.f32 %v1845_v57, %v1845_v57 }
 0x9d6   :  { %1847 = vadd.xlane.f32.xlu0 %v1846_v58 }
 0xa63   :  { %v1848_v59 = vpop.xlane.xlu0 %1847 }
 0xa64   :  { %v1849_v60 = vmul.f32 0.03125, %v1848_v59 }
 0xa66   :  { %v1850_v41 = vadd.f32 1e-05, %v1849_v60 }
 0xa68   :  { %2173 = vrsqrt.f32 %v1850_v41 }
 0xa72   :  { %v2174_v55 = vpop.eup %2173 }
 0xa73   :  { %v1852_v62 = vmul.f32 %v2174_v55, %v1845_v57 }
 0xa75   :  { %v1853_v63 = vmul.f32 %v1888_v0, %v1852_v62 }
 0xa77   :  { %v1854_v44 = vadd.f32 %v1889_v49, %v1853_v63 }
 0xa79   :  { %1855 = vst [vmem:[#allocation8 + $0x8] sm:$0xff] %v1854_v44 }
 0xa7a   :  { %2252 = shalt.err (!%p2249_p0)
}
 0xa7b   :  { %s2253_s24 = scalar_lea.hbm %s2592_s6, 256 }
 0xa7c   :  { %p2254_p1 = scmp.ne.s32.totalorder %s2592_s6, %s2253_s24  ;;  %p2257_p2 = scmp.lt.u32.totalorder %s2253_s24, %s2592_s6 }
 0xa7e   :  { %p2259_p3 = pnand %p2257_p2, %p2254_p1 }
 0xa80   :  { %2262 = shalt.err (!%p2259_p3)
}
 0xa81   :  { %1867 = dma.vmem_to_hbm [thread:$0]  %s1862_s20, 256, %s2592_s6, [#allocation4], %s2273_s1, %s2273_s1, %s2274_s21  }
 0xa82   :  { %2267 = dma.done.wait [#allocation4], 256  }
 0xa83   :  { %2268 = vsyncadd [#allocation4], 4294967040 }
 0xa84   :  { %1871 = vsyncpa [#allocation3], 1 }
 0xa85   :  { %1872 = vsyncpa [#allocation6], 1 }
 0xa86   :  { %1873 = vsyncpa [#allocation4], 1 }

</bundles_post_ra>
